<compile_context>
chip_gen: v7x
topology: tpu7x:2x2x1
jax: 0.10.0
libtpu: 0.0.40
codegen_flags: <defaults>
</compile_context>

<pallas_src>
import functools

import jax
import jax.numpy as jnp
from jax.experimental import pallas as pl
from jax.experimental.pallas import tpu as pltpu

# ---------------- model dims (small, synthetic) ----------------
SEQ = 8        # sequence length
HID = 32       # true hidden size
FFN = 64       # true feed-forward size
VOCAB = 64
N_SEG = 2
B_Q = 2        # number of questions
B_CTX = 4      # number of contexts

HID_PAD = 128  # lane-padded hidden size
FFN_PAD = 128  # lane-padded FFN size
LN_EPS = 1e-12


# ---------------- Pallas kernel: one encoder pass per grid step -------------
def biencoder_kernel(ids_ref, seg_ref, keymask_ref,
                     tok_emb_ref, seg_emb_ref, pos_emb_ref,
                     wkv_ref, bkv_ref, wq_ref, bq_ref, wo_ref, bo_ref,
                     g1_ref, be1_ref, w1_ref, b1_ref, w2_ref, b2_ref,
                     g2_ref, be2_ref,
                     out_ref, *, B, S, H, HP, rep_pos):
    """One sub-encoder (question or context) per grid step.

    B is the (padded) batch size, S the sequence length, HP the lane-padded
    hidden size.  Only the rep_pos row of each batch element is carried past
    the K/V projection (pooled output is the only consumer downstream).
    """
    BS = B * S
    f32 = jnp.float32
    bf16 = jnp.bfloat16

    # ---- embeddings: one-hot matmul gather (no dynamic gather needed) ----
    ids = ids_ref[...]                                              # (BS, 1) i32
    vocab_iota = jax.lax.broadcasted_iota(jnp.int32, (BS, VOCAB), 1)
    tok_oh = (ids == vocab_iota).astype(f32)                        # (BS, VOCAB)
    x2 = jnp.dot(tok_oh, tok_emb_ref[...], preferred_element_type=f32)  # (BS, HP)

    # TODO(synk): segment select assumes N_SEG == 2 (BERT token_type); use a
    # one-hot matmul like tok_emb if more segment types are ever needed.
    seg = seg_ref[...]                                              # (BS, 1) i32
    x2 = x2 + jnp.where(seg == 0, seg_emb_ref[0:1, :], seg_emb_ref[1:2, :])

    x3 = x2.reshape(B, S, HP) + pos_emb_ref[...][:S][None, :, :]    # (B, S, HP)
    x = x3.reshape(BS, HP)                                          # all tokens
    x_rep = x3[:, rep_pos, :]                                       # (B, HP)

    # ---- K/V projection for all tokens: single fused bf16 MXU push ----
    kv = jnp.dot(x.astype(bf16), wkv_ref[...],
                 preferred_element_type=f32) + bkv_ref[...]         # (BS, 2*HP)
    k = kv[:, :HP]
    v = kv[:, HP:]

    # ---- Q only for the representation-token rows ----
    q = jnp.dot(x_rep.astype(bf16), wq_ref[...],
                preferred_element_type=f32) + bq_ref[...]           # (B, HP)

    # ---- block-diagonal packed attention: one (B, BS) score matmul ----
    scale = float(H) ** -0.5                                        # compile-time
    scores = jax.lax.dot_general(
        q.astype(bf16), k.astype(bf16),
        dimension_numbers=(((1,), (1,)), ((), ())),
        preferred_element_type=f32) * scale                         # (B, BS)

    jpos = jax.lax.broadcasted_iota(jnp.int32, (B, BS), 1)          # key position
    qlo = jax.lax.broadcasted_iota(jnp.int32, (B, BS), 0) * S       # own-block start
    block_ok = jnp.logical_and(jpos >= qlo, jpos < qlo + S)
    keep = block_ok.astype(f32) * keymask_ref[...]                  # (B, BS)
    scores = scores + (keep - 1.0) * 1e9
    scores = scores - jnp.max(scores, axis=-1, keepdims=True)
    p = jnp.exp(scores)
    p = p * pl.reciprocal(jnp.sum(p, axis=-1, keepdims=True), approx=True)

    ctx = jnp.dot(p.astype(bf16), v.astype(bf16),
                  preferred_element_type=f32)                       # (B, HP)
    attn_out = jnp.dot(ctx.astype(bf16), wo_ref[...],
                       preferred_element_type=f32) + bo_ref[...]    # (B, HP)

    # ---- layernorm over the true H columns only (padded cols stay zero) ----
    col = jax.lax.broadcasted_iota(jnp.int32, (1, HP), 1)
    valid = (col < H).astype(f32)

    def layernorm(h, g, b):
        mu = jnp.sum(h, axis=-1, keepdims=True) * (1.0 / H)
        d = (h - mu) * valid
        var = jnp.sum(d * d, axis=-1, keepdims=True) * (1.0 / H)
        return d * jax.lax.rsqrt(var + LN_EPS) * g + b

    h1 = layernorm(x_rep + attn_out, g1_ref[...], be1_ref[...])     # (B, HP)

    # ---- feed-forward (rep rows only) ----
    # TODO(synk): HF/DPR BERT uses exact erf GELU; tanh approximation kept for
    # robust Mosaic lowering (synthetic sub-encoder, deviation ~1e-3).
    f = jnp.dot(h1.astype(bf16), w1_ref[...],
                preferred_element_type=f32) + b1_ref[...]
    f = jax.nn.gelu(f, approximate=True)
    f = jnp.dot(f.astype(bf16), w2_ref[...],
                preferred_element_type=f32) + b2_ref[...]

    y = layernorm(h1 + f, g2_ref[...], be2_ref[...])                # (B, HP)
    out_ref[...] = y.astype(out_ref.dtype)                          # lane-dense


def _stacked_spec(shape):
    """BlockSpec selecting element e of the leading encoder axis (squeezed)."""
    trail = tuple(int(d) for d in shape[1:])
    nd = len(trail)
    return pl.BlockSpec((None,) + trail, lambda e, _nd=nd: (e,) + (0,) * _nd)


def biencoder_pallas(inputs, params, *, B, S, rep_pos):
    """inputs/params stacked along a leading encoder axis E; grid=(E,)."""
    E = inputs["ids"].shape[0]
    kern = functools.partial(biencoder_kernel, B=B, S=S, H=HID, HP=HID_PAD,
                             rep_pos=int(rep_pos))
    args = (inputs["ids"], inputs["seg"], inputs["keymask"],
            params["tok_emb"], params["seg_emb"], params["pos_emb"],
            params["wkv"], params["bkv"], params["wq"], params["bq"],
            params["wo"], params["bo"], params["g1"], params["be1"],
            params["w1"], params["b1"], params["w2"], params["b2"],
            params["g2"], params["be2"])
    in_specs = [_stacked_spec(a.shape) for a in args]

    return pl.pallas_call(
        kern,
        out_shape=jax.ShapeDtypeStruct((E, B, HID_PAD), jnp.float32),
        grid_spec=pltpu.PrefetchScalarGridSpec(
            num_scalar_prefetch=0,
            grid=(E,),                     # question encoder + context encoder
            in_specs=in_specs,
            out_specs=pl.BlockSpec((None, B, HID_PAD), lambda e: (e, 0, 0)),
        ),
        # "parallel": the two encoder passes are independent -> on v7x they
        # shard across the two TensorCores; on v5e/v6e it is a sequential loop.
        compiler_params=pltpu.CompilerParams(
            dimension_semantics=("parallel",)),
        # NOTE: footprint is <1 MiB here; when scaling B/SEQ, add a batch grid
        # axis and set vmem_limit_bytes explicitly (v7x has 64 MiB physical).
    )(*args)


# ---------------- one-time parameter padding / fusion (hoisted out of jit) --
def _pad2(w, rows, cols):
    return jnp.pad(w, ((0, rows - w.shape[0]), (0, cols - w.shape[1])))


def _prepare_one(p):
    """Pad lane dims to 128, fuse K/V weights, cast matmul weights to bf16."""
    bf16 = jnp.bfloat16
    return {
        "tok_emb": _pad2(p["tok_emb"], VOCAB, HID_PAD),
        "seg_emb": _pad2(p["seg_emb"], N_SEG, HID_PAD),
        "pos_emb": _pad2(p["pos_emb"], SEQ, HID_PAD),
        "wkv": jnp.concatenate([_pad2(p["wk"], HID_PAD, HID_PAD),
                                _pad2(p["wv"], HID_PAD, HID_PAD)],
                               axis=1).astype(bf16),          # (HP, 2*HP)
        "bkv": jnp.concatenate([_pad2(p["bk"], 1, HID_PAD),
                                _pad2(p["bv"], 1, HID_PAD)], axis=1),
        "wq": _pad2(p["wq"], HID_PAD, HID_PAD).astype(bf16),
        "bq": _pad2(p["bq"], 1, HID_PAD),
        "wo": _pad2(p["wo"], HID_PAD, HID_PAD).astype(bf16),
        "bo": _pad2(p["bo"], 1, HID_PAD),
        "g1": _pad2(p["g1"], 1, HID_PAD),
        "be1": _pad2(p["be1"], 1, HID_PAD),
        "w1": _pad2(p["w1"], HID_PAD, FFN_PAD).astype(bf16),
        "b1": _pad2(p["b1"], 1, FFN_PAD),
        "w2": _pad2(p["w2"], FFN_PAD, HID_PAD).astype(bf16),
        "b2": _pad2(p["b2"], 1, HID_PAD),
        "g2": _pad2(p["g2"], 1, HID_PAD),
        "be2": _pad2(p["be2"], 1, HID_PAD),
    }


def prepare_biencoder_params(q_params, ctx_params):
    """Pad/fuse once and stack [question_model, ctx_model] along a new axis 0."""
    q = _prepare_one(q_params)
    c = _prepare_one(ctx_params)
    return jax.tree_util.tree_map(lambda a, b: jnp.stack([a, b]), q, c)


# ---------------- BiEncoder forward (mirrors BiEncoder.forward routing) -----
class CoordinateAscentStatus:
    DISABLED = 0
    TRAIN_Q = 1
    TRAIN_CTX = 2


def _pad_rows(x, rows):
    b = x.shape[0]
    if b == rows:
        return x
    return jnp.pad(x, ((0, rows - b),) + ((0, 0),) * (x.ndim - 1))


def biencoder_forward(packed, question_ids, question_segments, question_attn_mask,
                      context_ids, ctx_segments, ctx_attn_mask,
                      encoder_type=None, representation_token_pos=0,
                      coordinate_ascent_status=CoordinateAscentStatus.DISABLED,
                      fix_q_encoder=False, fix_ctx_encoder=False):
    """packed = prepare_biencoder_params(...) (stacked, padded, bf16 weights).

    fix_q_encoder / fix_ctx_encoder only toggle gradient flow in the PyTorch
    module; the forward math is identical, so they are accepted and ignored.
    TODO(synk): per-sample representation_token_pos tensors (selector output)
    are not supported; only a static scalar position is.
    """
    run_q = (coordinate_ascent_status != CoordinateAscentStatus.TRAIN_CTX
             and question_ids is not None)
    run_ctx = (coordinate_ascent_status != CoordinateAscentStatus.TRAIN_Q
               and context_ids is not None)
    if not (run_q or run_ctx):
        return None, None

    q_idx = 0 if (encoder_type is None or encoder_type == "question") else 1
    c_idx = 1 if (encoder_type is None or encoder_type == "ctx") else 0

    sides = []                              # (weight_index, ids, segments, mask)
    if run_q:
        sides.append((q_idx, question_ids, question_segments, question_attn_mask))
    if run_ctx:
        sides.append((c_idx, context_ids, ctx_segments, ctx_attn_mask))

    BMAX = max(ids.shape[0] for (_, ids, _, _) in sides)
    S = sides[0][1].shape[1]

    # Weight selection: the default routing (question=0, ctx=1) reuses the
    # pre-stacked pytree directly (zero copies inside jit).
    order = tuple(w for (w, _i, _s, _m) in sides)
    if order == tuple(range(packed["tok_emb"].shape[0])):
        params = packed
    else:
        params = jax.tree_util.tree_map(
            lambda a: jnp.stack([a[i] for i in order]), packed)

    ids_l, seg_l, msk_l = [], [], []
    for (_, ids, segs, msk) in sides:
        ids_l.append(_pad_rows(ids, BMAX).astype(jnp.int32).reshape(BMAX * S, 1))
        seg_l.append(_pad_rows(segs, BMAX).astype(jnp.int32).reshape(BMAX * S, 1))
        msk_l.append(_pad_rows(msk, BMAX).astype(jnp.float32).reshape(1, BMAX * S))

    inputs = {"ids": jnp.stack(ids_l),
              "seg": jnp.stack(seg_l),
              "keymask": jnp.stack(msk_l)}

    pooled = biencoder_pallas(inputs, params, B=BMAX, S=S,
                              rep_pos=int(representation_token_pos))

    outs = [pooled[slot, :ids.shape[0], :HID]
            for slot, (_, ids, _, _) in enumerate(sides)]
    q_pooled_out = outs[0] if run_q else None
    ctx_pooled_out = (outs[1] if run_q else outs[0]) if run_ctx else None
    return q_pooled_out, ctx_pooled_out


# ---------------- pure-JAX f32 reference (unpadded) for correctness ---------
def encoder_reference(ids, segments, attn_mask, p, rep_pos=0):
    B, S = ids.shape
    x = (p["tok_emb"][ids] + p["seg_emb"][segments]
         + p["pos_emb"][None, :S, :]).astype(jnp.float32)
    mask = attn_mask.astype(jnp.float32)[:, None, :]
    q = x @ p["wq"] + p["bq"]
    k = x @ p["wk"] + p["bk"]
    v = x @ p["wv"] + p["bv"]
    s = jnp.einsum('bqd,bkd->bqk', q, k) / jnp.sqrt(jnp.float32(HID))
    s = s + (mask - 1.0) * 1e9
    a = jax.nn.softmax(s, axis=-1)
    ctx = jnp.einsum('bqk,bkd->bqd', a, v)
    attn = ctx @ p["wo"] + p["bo"]

    def ln(h, g, b):
        mu = h.mean(-1, keepdims=True)
        var = ((h - mu) ** 2).mean(-1, keepdims=True)
        return (h - mu) * jax.lax.rsqrt(var + LN_EPS) * g + b

    h1 = ln(x + attn, p["g1"], p["be1"])
    f = jax.nn.gelu(h1 @ p["w1"] + p["b1"], approximate=True)
    y = ln(h1 + f @ p["w2"] + p["b2"], p["g2"], p["be2"])
    return y[:, rep_pos, :]


# ---------------- deterministic parameter init ----------------
def init_encoder_params(key):
    ks = jax.random.split(key, 12)
    s = 0.02
    return {
        "tok_emb": s * jax.random.normal(ks[0], (VOCAB, HID), jnp.float32),
        "seg_emb": s * jax.random.normal(ks[1], (N_SEG, HID), jnp.float32),
        "pos_emb": s * jax.random.normal(ks[2], (SEQ, HID), jnp.float32),
        "wq": s * jax.random.normal(ks[3], (HID, HID), jnp.float32),
        "bq": jnp.zeros((1, HID), jnp.float32),
        "wk": s * jax.random.normal(ks[4], (HID, HID), jnp.float32),
        "bk": jnp.zeros((1, HID), jnp.float32),
        "wv": s * jax.random.normal(ks[5], (HID, HID), jnp.float32),
        "bv": jnp.zeros((1, HID), jnp.float32),
        "wo": s * jax.random.normal(ks[6], (HID, HID), jnp.float32),
        "bo": jnp.zeros((1, HID), jnp.float32),
        "g1": jnp.ones((1, HID), jnp.float32),
        "be1": jnp.zeros((1, HID), jnp.float32),
        "w1": s * jax.random.normal(ks[7], (HID, FFN), jnp.float32),
        "b1": jnp.zeros((1, FFN), jnp.float32),
        "w2": s * jax.random.normal(ks[8], (FFN, HID), jnp.float32),
        "b2": jnp.zeros((1, HID), jnp.float32),
        "g2": jnp.ones((1, HID), jnp.float32),
        "be2": jnp.zeros((1, HID), jnp.float32),
    }


if __name__ == "__main__":
    root = jax.random.PRNGKey(0)
    kq, kc, k_ids_q, k_ids_c = jax.random.split(root, 4)

    q_params = init_encoder_params(kq)
    ctx_params = init_encoder_params(kc)

    # One-time weight padding / K-V fusion / bf16 cast (hoisted out of jit).
    packed = prepare_biencoder_params(q_params, ctx_params)
    packed = jax.tree_util.tree_map(jax.block_until_ready, packed)

    # inputs: question batch (2, 8), context batch (4, 8)
    question_ids = jax.random.randint(k_ids_q, (B_Q, SEQ), 0, VOCAB, jnp.int32)
    context_ids = jax.random.randint(k_ids_c, (B_CTX, SEQ), 0, VOCAB, jnp.int32)
    question_segments = jnp.zeros((B_Q, SEQ), jnp.int32)
    ctx_segments = jnp.zeros((B_CTX, SEQ), jnp.int32)
    # attention masks: last two positions padded
    question_attn_mask = jnp.concatenate(
        [jnp.ones((B_Q, SEQ - 2), jnp.int32), jnp.zeros((B_Q, 2), jnp.int32)], axis=1)
    ctx_attn_mask = jnp.concatenate(
        [jnp.ones((B_CTX, SEQ - 2), jnp.int32), jnp.zeros((B_CTX, 2), jnp.int32)], axis=1)

    fwd = jax.jit(functools.partial(
        biencoder_forward, encoder_type=None, representation_token_pos=0,
        coordinate_ascent_status=CoordinateAscentStatus.DISABLED))

    q_pooled, ctx_pooled = fwd(packed,
                               question_ids, question_segments, question_attn_mask,
                               context_ids, ctx_segments, ctx_attn_mask)
    jax.block_until_ready((q_pooled, ctx_pooled))

    assert q_pooled.shape == (B_Q, HID)
    assert ctx_pooled.shape == (B_CTX, HID)
    assert jnp.all(jnp.isfinite(q_pooled)) and jnp.all(jnp.isfinite(ctx_pooled))

    # correctness vs. plain-JAX f32 reference (bf16 matmul operands + approx
    # reciprocal in softmax => loose-ish tolerance)
    q_ref = encoder_reference(question_ids, question_segments, question_attn_mask,
                              q_params, rep_pos=0)
    c_ref = encoder_reference(context_ids, ctx_segments, ctx_attn_mask,
                              ctx_params, rep_pos=0)
    assert jnp.allclose(q_pooled, q_ref, atol=2e-2, rtol=2e-2)
    assert jnp.allclose(ctx_pooled, c_ref, atol=2e-2, rtol=2e-2)

    # TODO(synk): coordinate-ascent precompute paths (_precompute_embeddings_*),
    # create_biencoder_input and checkpoint load/save are host-side data-pipeline
    # utilities, not part of the forward hot path.
    print("KERNEL_OK")
</pallas_src>

<mosaic_0001>
module attributes {stable_mosaic.version = 11 : i64} {
  func.func @biencoder_kernel(%arg0: i32, %arg1: memref<1x32x1xi32, #tpu.memory_space<vmem>>, %arg2: memref<1x32x1xi32, #tpu.memory_space<vmem>>, %arg3: memref<1x1x32xf32, #tpu.memory_space<vmem>>, %arg4: memref<1x64x128xf32, #tpu.memory_space<vmem>>, %arg5: memref<1x2x128xf32, #tpu.memory_space<vmem>>, %arg6: memref<1x8x128xf32, #tpu.memory_space<vmem>>, %arg7: memref<1x128x256xbf16, #tpu.memory_space<vmem>>, %arg8: memref<1x1x256xf32, #tpu.memory_space<vmem>>, %arg9: memref<1x128x128xbf16, #tpu.memory_space<vmem>>, %arg10: memref<1x1x128xf32, #tpu.memory_space<vmem>>, %arg11: memref<1x128x128xbf16, #tpu.memory_space<vmem>>, %arg12: memref<1x1x128xf32, #tpu.memory_space<vmem>>, %arg13: memref<1x1x128xf32, #tpu.memory_space<vmem>>, %arg14: memref<1x1x128xf32, #tpu.memory_space<vmem>>, %arg15: memref<1x128x128xbf16, #tpu.memory_space<vmem>>, %arg16: memref<1x1x128xf32, #tpu.memory_space<vmem>>, %arg17: memref<1x128x128xbf16, #tpu.memory_space<vmem>>, %arg18: memref<1x1x128xf32, #tpu.memory_space<vmem>>, %arg19: memref<1x1x128xf32, #tpu.memory_space<vmem>>, %arg20: memref<1x1x128xf32, #tpu.memory_space<vmem>>, %arg21: memref<1x4x128xf32, #tpu.memory_space<vmem>>) attributes {dimension_semantics = [#tpu.dimension_semantics<parallel>], iteration_bounds = array<i64: 2>, scalar_prefetch = 0 : i64, scratch_operands = 0 : i64, tpu.core_type = #tpu.core_type<tc>, window_params = [{transform_indices = @transform_0, window_bounds = array<i64: 1, 32, 1>}, {transform_indices = @transform_1, window_bounds = array<i64: 1, 32, 1>}, {transform_indices = @transform_2, window_bounds = array<i64: 1, 1, 32>}, {transform_indices = @transform_3, window_bounds = array<i64: 1, 64, 128>}, {transform_indices = @transform_4, window_bounds = array<i64: 1, 2, 128>}, {transform_indices = @transform_5, window_bounds = array<i64: 1, 8, 128>}, {transform_indices = @transform_6, window_bounds = array<i64: 1, 128, 256>}, {transform_indices = @transform_7, window_bounds = array<i64: 1, 1, 256>}, {transform_indices = @transform_8, window_bounds = array<i64: 1, 128, 128>}, {transform_indices = @transform_9, window_bounds = array<i64: 1, 1, 128>}, {transform_indices = @transform_10, window_bounds = array<i64: 1, 128, 128>}, {transform_indices = @transform_11, window_bounds = array<i64: 1, 1, 128>}, {transform_indices = @transform_12, window_bounds = array<i64: 1, 1, 128>}, {transform_indices = @transform_13, window_bounds = array<i64: 1, 1, 128>}, {transform_indices = @transform_14, window_bounds = array<i64: 1, 128, 128>}, {transform_indices = @transform_15, window_bounds = array<i64: 1, 1, 128>}, {transform_indices = @transform_16, window_bounds = array<i64: 1, 128, 128>}, {transform_indices = @transform_17, window_bounds = array<i64: 1, 1, 128>}, {transform_indices = @transform_18, window_bounds = array<i64: 1, 1, 128>}, {transform_indices = @transform_19, window_bounds = array<i64: 1, 1, 128>}, {transform_indices = @transform_20, window_bounds = array<i64: 1, 4, 128>}]} {
    %c0 = arith.constant 0 : index
    %c0_0 = arith.constant 0 : index
    %c0_1 = arith.constant 0 : index
    %0 = vector.load %arg1[%c0, %c0_0, %c0_1] : memref<1x32x1xi32, #tpu.memory_space<vmem>>, vector<1x32x1xi32>
    %1 = vector.shape_cast %0 : vector<1x32x1xi32> to vector<32x1xi32>
    %2 = tpu.iota {dimensions = array<i32: 1>} : vector<32x64xi32>
    %3 = vector.broadcast %1 : vector<32x1xi32> to vector<32x64xi32>
    %4 = arith.cmpi eq, %3, %2 : vector<32x64xi32>
    %5 = arith.extui %4 : vector<32x64xi1> to vector<32x64xi32>
    %6 = arith.sitofp %5 : vector<32x64xi32> to vector<32x64xf32>
    %c0_2 = arith.constant 0 : index
    %c0_3 = arith.constant 0 : index
    %c0_4 = arith.constant 0 : index
    %7 = vector.load %arg4[%c0_2, %c0_3, %c0_4] : memref<1x64x128xf32, #tpu.memory_space<vmem>>, vector<1x64x128xf32>
    %8 = vector.shape_cast %7 : vector<1x64x128xf32> to vector<64x128xf32>
    %cst = arith.constant dense<0.000000e+00> : vector<32x128xf32>
    %9 = tpu.matmul %6, %8, %cst {dimension_numbers = #tpu.dot_dimension_numbers<[1], [0], [0], [1], [0, 0, 1, 1], [], []>} : vector<32x64xf32>, vector<64x128xf32>, vector<32x128xf32> -> vector<32x128xf32>
    %c0_5 = arith.constant 0 : index
    %c0_6 = arith.constant 0 : index
    %c0_7 = arith.constant 0 : index
    %10 = vector.load %arg2[%c0_5, %c0_6, %c0_7] : memref<1x32x1xi32, #tpu.memory_space<vmem>>, vector<1x32x1xi32>
    %11 = vector.shape_cast %10 : vector<1x32x1xi32> to vector<32x1xi32>
    %c0_i32 = arith.constant 0 : i32
    %12 = vector.broadcast %c0_i32 : i32 to vector<32x1xi32>
    %13 = arith.cmpi eq, %11, %12 : vector<32x1xi32>
    %c0_8 = arith.constant 0 : index
    %c0_9 = arith.constant 0 : index
    %c0_10 = arith.constant 0 : index
    %14 = vector.load %arg5[%c0_8, %c0_9, %c0_10] : memref<1x2x128xf32, #tpu.memory_space<vmem>>, vector<1x1x128xf32>
    %15 = vector.shape_cast %14 : vector<1x1x128xf32> to vector<1x128xf32>
    %c0_11 = arith.constant 0 : index
    %c1 = arith.constant 1 : index
    %c0_12 = arith.constant 0 : index
    %16 = vector.load %arg5[%c0_11, %c1, %c0_12] : memref<1x2x128xf32, #tpu.memory_space<vmem>>, vector<1x1x128xf32>
    %17 = vector.shape_cast %16 : vector<1x1x128xf32> to vector<1x128xf32>
    %18 = vector.shape_cast %13 : vector<32x1xi1> to vector<32x1xi1>
    %19 = vector.broadcast %18 : vector<32x1xi1> to vector<32x128xi1>
    %20 = vector.shape_cast %15 : vector<1x128xf32> to vector<1x128xf32>
    %21 = vector.broadcast %20 : vector<1x128xf32> to vector<32x128xf32>
    %22 = vector.shape_cast %17 : vector<1x128xf32> to vector<1x128xf32>
    %23 = vector.broadcast %22 : vector<1x128xf32> to vector<32x128xf32>
    %24 = arith.select %19, %21, %23 : vector<32x128xi1>, vector<32x128xf32>
    %25 = arith.addf %9, %24 : vector<32x128xf32>
    %26 = vector.shape_cast %25 : vector<32x128xf32> to vector<4x8x128xf32>
    %c0_13 = arith.constant 0 : index
    %c0_14 = arith.constant 0 : index
    %c0_15 = arith.constant 0 : index
    %27 = vector.load %arg6[%c0_13, %c0_14, %c0_15] : memref<1x8x128xf32, #tpu.memory_space<vmem>>, vector<1x8x128xf32>
    %28 = vector.shape_cast %27 : vector<1x8x128xf32> to vector<8x128xf32>
    %29 = vector.shape_cast %28 : vector<8x128xf32> to vector<1x8x128xf32>
    %30 = vector.broadcast %29 : vector<1x8x128xf32> to vector<4x8x128xf32>
    %31 = arith.addf %26, %30 : vector<4x8x128xf32>
    %32 = vector.shape_cast %31 : vector<4x8x128xf32> to vector<32x128xf32>
    %33 = vector.extract_strided_slice %31 {offsets = [0, 0, 0], sizes = [4, 1, 128], strides = [1, 1, 1]} : vector<4x8x128xf32> to vector<4x1x128xf32>
    %34 = vector.shape_cast %33 : vector<4x1x128xf32> to vector<4x128xf32>
    %35 = arith.truncf %32 : vector<32x128xf32> to vector<32x128xbf16>
    %c0_16 = arith.constant 0 : index
    %c0_17 = arith.constant 0 : index
    %c0_18 = arith.constant 0 : index
    %36 = vector.load %arg7[%c0_16, %c0_17, %c0_18] : memref<1x128x256xbf16, #tpu.memory_space<vmem>>, vector<1x128x256xbf16>
    %37 = vector.shape_cast %36 : vector<1x128x256xbf16> to vector<128x256xbf16>
    %cst_19 = arith.constant dense<0.000000e+00> : vector<32x256xf32>
    %38 = tpu.matmul %35, %37, %cst_19 {dimension_numbers = #tpu.dot_dimension_numbers<[1], [0], [0], [1], [0, 0, 1, 1], [], []>} : vector<32x128xbf16>, vector<128x256xbf16>, vector<32x256xf32> -> vector<32x256xf32>
    %c0_20 = arith.constant 0 : index
    %c0_21 = arith.constant 0 : index
    %c0_22 = arith.constant 0 : index
    %39 = vector.load %arg8[%c0_20, %c0_21, %c0_22] : memref<1x1x256xf32, #tpu.memory_space<vmem>>, vector<1x1x256xf32>
    %40 = vector.shape_cast %39 : vector<1x1x256xf32> to vector<1x256xf32>
    %41 = vector.broadcast %40 : vector<1x256xf32> to vector<32x256xf32>
    %42 = arith.addf %38, %41 : vector<32x256xf32>
    %43 = vector.extract_strided_slice %42 {offsets = [0, 0], sizes = [32, 128], strides = [1, 1]} : vector<32x256xf32> to vector<32x128xf32>
    %44 = vector.extract_strided_slice %42 {offsets = [0, 128], sizes = [32, 128], strides = [1, 1]} : vector<32x256xf32> to vector<32x128xf32>
    %45 = arith.truncf %34 : vector<4x128xf32> to vector<4x128xbf16>
    %c0_23 = arith.constant 0 : index
    %c0_24 = arith.constant 0 : index
    %c0_25 = arith.constant 0 : index
    %46 = vector.load %arg9[%c0_23, %c0_24, %c0_25] : memref<1x128x128xbf16, #tpu.memory_space<vmem>>, vector<1x128x128xbf16>
    %47 = vector.shape_cast %46 : vector<1x128x128xbf16> to vector<128x128xbf16>
    %cst_26 = arith.constant dense<0.000000e+00> : vector<4x128xf32>
    %48 = tpu.matmul %45, %47, %cst_26 {dimension_numbers = #tpu.dot_dimension_numbers<[1], [0], [0], [1], [0, 0, 1, 1], [], []>} : vector<4x128xbf16>, vector<128x128xbf16>, vector<4x128xf32> -> vector<4x128xf32>
    %c0_27 = arith.constant 0 : index
    %c0_28 = arith.constant 0 : index
    %c0_29 = arith.constant 0 : index
    %49 = vector.load %arg10[%c0_27, %c0_28, %c0_29] : memref<1x1x128xf32, #tpu.memory_space<vmem>>, vector<1x1x128xf32>
    %50 = vector.shape_cast %49 : vector<1x1x128xf32> to vector<1x128xf32>
    %51 = vector.broadcast %50 : vector<1x128xf32> to vector<4x128xf32>
    %52 = arith.addf %48, %51 : vector<4x128xf32>
    %53 = arith.truncf %52 : vector<4x128xf32> to vector<4x128xbf16>
    %54 = arith.truncf %43 : vector<32x128xf32> to vector<32x128xbf16>
    %cst_30 = arith.constant dense<0.000000e+00> : vector<4x32xf32>
    %55 = tpu.matmul %53, %54, %cst_30 {dimension_numbers = #tpu.dot_dimension_numbers<[1], [1], [0], [0], [0, 0, 1, 0], [], []>} : vector<4x128xbf16>, vector<32x128xbf16>, vector<4x32xf32> -> vector<4x32xf32>
    %cst_31 = arith.constant 0.176776692 : f32
    %56 = vector.broadcast %cst_31 : f32 to vector<4x32xf32>
    %57 = arith.mulf %55, %56 : vector<4x32xf32>
    %58 = tpu.iota {dimensions = array<i32: 1>} : vector<4x32xi32>
    %59 = tpu.iota {dimensions = array<i32: 0>} : vector<4x32xi32>
    %c8_i32 = arith.constant 8 : i32
    %60 = vector.broadcast %c8_i32 : i32 to vector<4x32xi32>
    %61 = arith.muli %59, %60 : vector<4x32xi32>
    %62 = arith.cmpi sge, %58, %61 : vector<4x32xi32>
    %c8_i32_32 = arith.constant 8 : i32
    %63 = vector.broadcast %c8_i32_32 : i32 to vector<4x32xi32>
    %64 = arith.addi %61, %63 : vector<4x32xi32>
    %65 = arith.cmpi slt, %58, %64 : vector<4x32xi32>
    %66 = arith.andi %62, %65 : vector<4x32xi1>
    %67 = arith.extui %66 : vector<4x32xi1> to vector<4x32xi32>
    %68 = arith.sitofp %67 : vector<4x32xi32> to vector<4x32xf32>
    %c0_33 = arith.constant 0 : index
    %c0_34 = arith.constant 0 : index
    %c0_35 = arith.constant 0 : index
    %69 = vector.load %arg3[%c0_33, %c0_34, %c0_35] : memref<1x1x32xf32, #tpu.memory_space<vmem>>, vector<1x1x32xf32>
    %70 = vector.shape_cast %69 : vector<1x1x32xf32> to vector<1x32xf32>
    %71 = vector.broadcast %70 : vector<1x32xf32> to vector<4x32xf32>
    %72 = arith.mulf %68, %71 : vector<4x32xf32>
    %cst_36 = arith.constant 1.000000e+00 : f32
    %73 = vector.broadcast %cst_36 : f32 to vector<4x32xf32>
    %74 = arith.subf %72, %73 : vector<4x32xf32>
    %cst_37 = arith.constant 1.000000e+09 : f32
    %75 = vector.broadcast %cst_37 : f32 to vector<4x32xf32>
    %76 = arith.mulf %74, %75 : vector<4x32xf32>
    %77 = arith.addf %57, %76 : vector<4x32xf32>
    %cst_38 = arith.constant dense<0xFF800000> : vector<4xf32>
    %78 = vector.multi_reduction <maximumf>, %77, %cst_38 [1] : vector<4x32xf32> to vector<4xf32>
    %79 = vector.shape_cast %78 : vector<4xf32> to vector<4x1xf32>
    %80 = vector.broadcast %79 : vector<4x1xf32> to vector<4x32xf32>
    %81 = arith.subf %77, %80 : vector<4x32xf32>
    %82 = math.exp %81 : vector<4x32xf32>
    %cst_39 = arith.constant dense<0.000000e+00> : vector<4xf32>
    %83 = vector.multi_reduction <add>, %82, %cst_39 [1] : vector<4x32xf32> to vector<4xf32>
    %84 = vector.shape_cast %83 : vector<4xf32> to vector<4x1xf32>
    %85 = tpu.reciprocal %84 {approx = true} : vector<4x1xf32> -> vector<4x1xf32>
    %86 = vector.broadcast %85 : vector<4x1xf32> to vector<4x32xf32>
    %87 = arith.mulf %82, %86 : vector<4x32xf32>
    %88 = arith.truncf %87 : vector<4x32xf32> to vector<4x32xbf16>
    %89 = arith.truncf %44 : vector<32x128xf32> to vector<32x128xbf16>
    %cst_40 = arith.constant dense<0.000000e+00> : vector<4x128xf32>
    %90 = tpu.matmul %88, %89, %cst_40 {dimension_numbers = #tpu.dot_dimension_numbers<[1], [0], [0], [1], [0, 0, 1, 1], [], []>} : vector<4x32xbf16>, vector<32x128xbf16>, vector<4x128xf32> -> vector<4x128xf32>
    %91 = arith.truncf %90 : vector<4x128xf32> to vector<4x128xbf16>
    %c0_41 = arith.constant 0 : index
    %c0_42 = arith.constant 0 : index
    %c0_43 = arith.constant 0 : index
    %92 = vector.load %arg11[%c0_41, %c0_42, %c0_43] : memref<1x128x128xbf16, #tpu.memory_space<vmem>>, vector<1x128x128xbf16>
    %93 = vector.shape_cast %92 : vector<1x128x128xbf16> to vector<128x128xbf16>
    %cst_44 = arith.constant dense<0.000000e+00> : vector<4x128xf32>
    %94 = tpu.matmul %91, %93, %cst_44 {dimension_numbers = #tpu.dot_dimension_numbers<[1], [0], [0], [1], [0, 0, 1, 1], [], []>} : vector<4x128xbf16>, vector<128x128xbf16>, vector<4x128xf32> -> vector<4x128xf32>
    %c0_45 = arith.constant 0 : index
    %c0_46 = arith.constant 0 : index
    %c0_47 = arith.constant 0 : index
    %95 = vector.load %arg12[%c0_45, %c0_46, %c0_47] : memref<1x1x128xf32, #tpu.memory_space<vmem>>, vector<1x1x128xf32>
    %96 = vector.shape_cast %95 : vector<1x1x128xf32> to vector<1x128xf32>
    %97 = vector.broadcast %96 : vector<1x128xf32> to vector<4x128xf32>
    %98 = arith.addf %94, %97 : vector<4x128xf32>
    %99 = tpu.iota {dimensions = array<i32: 1>} : vector<1x128xi32>
    %c32_i32 = arith.constant 32 : i32
    %100 = vector.broadcast %c32_i32 : i32 to vector<1x128xi32>
    %101 = arith.cmpi slt, %99, %100 : vector<1x128xi32>
    %102 = arith.extui %101 : vector<1x128xi1> to vector<1x128xi32>
    %103 = arith.sitofp %102 : vector<1x128xi32> to vector<1x128xf32>
    %104 = arith.addf %34, %98 : vector<4x128xf32>
    %c0_48 = arith.constant 0 : index
    %c0_49 = arith.constant 0 : index
    %c0_50 = arith.constant 0 : index
    %105 = vector.load %arg13[%c0_48, %c0_49, %c0_50] : memref<1x1x128xf32, #tpu.memory_space<vmem>>, vector<1x1x128xf32>
    %106 = vector.shape_cast %105 : vector<1x1x128xf32> to vector<1x128xf32>
    %c0_51 = arith.constant 0 : index
    %c0_52 = arith.constant 0 : index
    %c0_53 = arith.constant 0 : index
    %107 = vector.load %arg14[%c0_51, %c0_52, %c0_53] : memref<1x1x128xf32, #tpu.memory_space<vmem>>, vector<1x1x128xf32>
    %108 = vector.shape_cast %107 : vector<1x1x128xf32> to vector<1x128xf32>
    %cst_54 = arith.constant dense<0.000000e+00> : vector<4xf32>
    %109 = vector.multi_reduction <add>, %104, %cst_54 [1] : vector<4x128xf32> to vector<4xf32>
    %110 = vector.shape_cast %109 : vector<4xf32> to vector<4x1xf32>
    %cst_55 = arith.constant 3.125000e-02 : f32
    %111 = vector.broadcast %cst_55 : f32 to vector<4x1xf32>
    %112 = arith.mulf %110, %111 : vector<4x1xf32>
    %113 = vector.broadcast %112 : vector<4x1xf32> to vector<4x128xf32>
    %114 = arith.subf %104, %113 : vector<4x128xf32>
    %115 = vector.broadcast %103 : vector<1x128xf32> to vector<4x128xf32>
    %116 = arith.mulf %114, %115 : vector<4x128xf32>
    %117 = arith.mulf %116, %116 : vector<4x128xf32>
    %cst_56 = arith.constant dense<0.000000e+00> : vector<4xf32>
    %118 = vector.multi_reduction <add>, %117, %cst_56 [1] : vector<4x128xf32> to vector<4xf32>
    %119 = vector.shape_cast %118 : vector<4xf32> to vector<4x1xf32>
    %cst_57 = arith.constant 3.125000e-02 : f32
    %120 = vector.broadcast %cst_57 : f32 to vector<4x1xf32>
    %121 = arith.mulf %119, %120 : vector<4x1xf32>
    %cst_58 = arith.constant 9.99999996E-13 : f32
    %122 = vector.broadcast %cst_58 : f32 to vector<4x1xf32>
    %123 = arith.addf %121, %122 : vector<4x1xf32>
    %124 = math.rsqrt %123 : vector<4x1xf32>
    %125 = vector.broadcast %124 : vector<4x1xf32> to vector<4x128xf32>
    %126 = arith.mulf %116, %125 : vector<4x128xf32>
    %127 = vector.broadcast %106 : vector<1x128xf32> to vector<4x128xf32>
    %128 = arith.mulf %126, %127 : vector<4x128xf32>
    %129 = vector.broadcast %108 : vector<1x128xf32> to vector<4x128xf32>
    %130 = arith.addf %128, %129 : vector<4x128xf32>
    %131 = arith.truncf %130 : vector<4x128xf32> to vector<4x128xbf16>
    %c0_59 = arith.constant 0 : index
    %c0_60 = arith.constant 0 : index
    %c0_61 = arith.constant 0 : index
    %132 = vector.load %arg15[%c0_59, %c0_60, %c0_61] : memref<1x128x128xbf16, #tpu.memory_space<vmem>>, vector<1x128x128xbf16>
    %133 = vector.shape_cast %132 : vector<1x128x128xbf16> to vector<128x128xbf16>
    %cst_62 = arith.constant dense<0.000000e+00> : vector<4x128xf32>
    %134 = tpu.matmul %131, %133, %cst_62 {dimension_numbers = #tpu.dot_dimension_numbers<[1], [0], [0], [1], [0, 0, 1, 1], [], []>} : vector<4x128xbf16>, vector<128x128xbf16>, vector<4x128xf32> -> vector<4x128xf32>
    %c0_63 = arith.constant 0 : index
    %c0_64 = arith.constant 0 : index
    %c0_65 = arith.constant 0 : index
    %135 = vector.load %arg16[%c0_63, %c0_64, %c0_65] : memref<1x1x128xf32, #tpu.memory_space<vmem>>, vector<1x1x128xf32>
    %136 = vector.shape_cast %135 : vector<1x1x128xf32> to vector<1x128xf32>
    %137 = vector.broadcast %136 : vector<1x128xf32> to vector<4x128xf32>
    %138 = arith.addf %134, %137 : vector<4x128xf32>
    %139 = arith.mulf %138, %138 : vector<4x128xf32>
    %140 = arith.mulf %138, %139 : vector<4x128xf32>
    %cst_66 = arith.constant 4.471500e-02 : f32
    %141 = vector.broadcast %cst_66 : f32 to vector<4x128xf32>
    %142 = arith.mulf %141, %140 : vector<4x128xf32>
    %143 = arith.addf %138, %142 : vector<4x128xf32>
    %cst_67 = arith.constant 0.797884583 : f32
    %144 = vector.broadcast %cst_67 : f32 to vector<4x128xf32>
    %145 = arith.mulf %144, %143 : vector<4x128xf32>
    %146 = math.tanh %145 : vector<4x128xf32>
    %cst_68 = arith.constant 1.000000e+00 : f32
    %147 = vector.broadcast %cst_68 : f32 to vector<4x128xf32>
    %148 = arith.addf %147, %146 : vector<4x128xf32>
    %cst_69 = arith.constant 5.000000e-01 : f32
    %149 = vector.broadcast %cst_69 : f32 to vector<4x128xf32>
    %150 = arith.mulf %149, %148 : vector<4x128xf32>
    %151 = arith.mulf %138, %150 : vector<4x128xf32>
    %152 = arith.truncf %151 : vector<4x128xf32> to vector<4x128xbf16>
    %c0_70 = arith.constant 0 : index
    %c0_71 = arith.constant 0 : index
    %c0_72 = arith.constant 0 : index
    %153 = vector.load %arg17[%c0_70, %c0_71, %c0_72] : memref<1x128x128xbf16, #tpu.memory_space<vmem>>, vector<1x128x128xbf16>
    %154 = vector.shape_cast %153 : vector<1x128x128xbf16> to vector<128x128xbf16>
    %cst_73 = arith.constant dense<0.000000e+00> : vector<4x128xf32>
    %155 = tpu.matmul %152, %154, %cst_73 {dimension_numbers = #tpu.dot_dimension_numbers<[1], [0], [0], [1], [0, 0, 1, 1], [], []>} : vector<4x128xbf16>, vector<128x128xbf16>, vector<4x128xf32> -> vector<4x128xf32>
    %c0_74 = arith.constant 0 : index
    %c0_75 = arith.constant 0 : index
    %c0_76 = arith.constant 0 : index
    %156 = vector.load %arg18[%c0_74, %c0_75, %c0_76] : memref<1x1x128xf32, #tpu.memory_space<vmem>>, vector<1x1x128xf32>
    %157 = vector.shape_cast %156 : vector<1x1x128xf32> to vector<1x128xf32>
    %158 = vector.broadcast %157 : vector<1x128xf32> to vector<4x128xf32>
    %159 = arith.addf %155, %158 : vector<4x128xf32>
    %160 = arith.addf %130, %159 : vector<4x128xf32>
    %c0_77 = arith.constant 0 : index
    %c0_78 = arith.constant 0 : index
    %c0_79 = arith.constant 0 : index
    %161 = vector.load %arg19[%c0_77, %c0_78, %c0_79] : memref<1x1x128xf32, #tpu.memory_space<vmem>>, vector<1x1x128xf32>
    %162 = vector.shape_cast %161 : vector<1x1x128xf32> to vector<1x128xf32>
    %c0_80 = arith.constant 0 : index
    %c0_81 = arith.constant 0 : index
    %c0_82 = arith.constant 0 : index
    %163 = vector.load %arg20[%c0_80, %c0_81, %c0_82] : memref<1x1x128xf32, #tpu.memory_space<vmem>>, vector<1x1x128xf32>
    %164 = vector.shape_cast %163 : vector<1x1x128xf32> to vector<1x128xf32>
    %cst_83 = arith.constant dense<0.000000e+00> : vector<4xf32>
    %165 = vector.multi_reduction <add>, %160, %cst_83 [1] : vector<4x128xf32> to vector<4xf32>
    %166 = vector.shape_cast %165 : vector<4xf32> to vector<4x1xf32>
    %cst_84 = arith.constant 3.125000e-02 : f32
    %167 = vector.broadcast %cst_84 : f32 to vector<4x1xf32>
    %168 = arith.mulf %166, %167 : vector<4x1xf32>
    %169 = vector.broadcast %168 : vector<4x1xf32> to vector<4x128xf32>
    %170 = arith.subf %160, %169 : vector<4x128xf32>
    %171 = vector.broadcast %103 : vector<1x128xf32> to vector<4x128xf32>
    %172 = arith.mulf %170, %171 : vector<4x128xf32>
    %173 = arith.mulf %172, %172 : vector<4x128xf32>
    %cst_85 = arith.constant dense<0.000000e+00> : vector<4xf32>
    %174 = vector.multi_reduction <add>, %173, %cst_85 [1] : vector<4x128xf32> to vector<4xf32>
    %175 = vector.shape_cast %174 : vector<4xf32> to vector<4x1xf32>
    %cst_86 = arith.constant 3.125000e-02 : f32
    %176 = vector.broadcast %cst_86 : f32 to vector<4x1xf32>
    %177 = arith.mulf %175, %176 : vector<4x1xf32>
    %cst_87 = arith.constant 9.99999996E-13 : f32
    %178 = vector.broadcast %cst_87 : f32 to vector<4x1xf32>
    %179 = arith.addf %177, %178 : vector<4x1xf32>
    %180 = math.rsqrt %179 : vector<4x1xf32>
    %181 = vector.broadcast %180 : vector<4x1xf32> to vector<4x128xf32>
    %182 = arith.mulf %172, %181 : vector<4x128xf32>
    %183 = vector.broadcast %162 : vector<1x128xf32> to vector<4x128xf32>
    %184 = arith.mulf %182, %183 : vector<4x128xf32>
    %185 = vector.broadcast %164 : vector<1x128xf32> to vector<4x128xf32>
    %186 = arith.addf %184, %185 : vector<4x128xf32>
    %c0_88 = arith.constant 0 : index
    %c0_89 = arith.constant 0 : index
    %c0_90 = arith.constant 0 : index
    %187 = vector.load %arg21[%c0_88, %c0_89, %c0_90] : memref<1x4x128xf32, #tpu.memory_space<vmem>>, vector<1x4x128xf32>
    %188 = vector.shape_cast %187 : vector<1x4x128xf32> to vector<4x128xf32>
    %189 = vector.shape_cast %186 : vector<4x128xf32> to vector<1x4x128xf32>
    tpu.vector_store %arg21[%c0_88, %c0_89, %c0_90], %189 {strides = array<i32>} : memref<1x4x128xf32, #tpu.memory_space<vmem>>, vector<1x4x128xf32>,
    return
  }
  func.func @transform_0(%arg0: i32) -> (i32, i32, i32) {
    %c0_i32 = arith.constant 0 : i32
    %c0_i32_0 = arith.constant 0 : i32
    %c0_i32_1 = arith.constant 0 : i32
    return %arg0, %c0_i32, %c0_i32_0 : i32, i32, i32
  }
  func.func @transform_1(%arg0: i32) -> (i32, i32, i32) {
    %c0_i32 = arith.constant 0 : i32
    %c0_i32_0 = arith.constant 0 : i32
    %c0_i32_1 = arith.constant 0 : i32
    return %arg0, %c0_i32, %c0_i32_0 : i32, i32, i32
  }
  func.func @transform_2(%arg0: i32) -> (i32, i32, i32) {
    %c0_i32 = arith.constant 0 : i32
    %c0_i32_0 = arith.constant 0 : i32
    %c0_i32_1 = arith.constant 0 : i32
    return %arg0, %c0_i32, %c0_i32_0 : i32, i32, i32
  }
  func.func @transform_3(%arg0: i32) -> (i32, i32, i32) {
    %c0_i32 = arith.constant 0 : i32
    %c0_i32_0 = arith.constant 0 : i32
    %c0_i32_1 = arith.constant 0 : i32
    return %arg0, %c0_i32, %c0_i32_0 : i32, i32, i32
  }
  func.func @transform_4(%arg0: i32) -> (i32, i32, i32) {
    %c0_i32 = arith.constant 0 : i32
    %c0_i32_0 = arith.constant 0 : i32
    %c0_i32_1 = arith.constant 0 : i32
    return %arg0, %c0_i32, %c0_i32_0 : i32, i32, i32
  }
  func.func @transform_5(%arg0: i32) -> (i32, i32, i32) {
    %c0_i32 = arith.constant 0 : i32
    %c0_i32_0 = arith.constant 0 : i32
    %c0_i32_1 = arith.constant 0 : i32
    return %arg0, %c0_i32, %c0_i32_0 : i32, i32, i32
  }
  func.func @transform_6(%arg0: i32) -> (i32, i32, i32) {
    %c0_i32 = arith.constant 0 : i32
    %c0_i32_0 = arith.constant 0 : i32
    %c0_i32_1 = arith.constant 0 : i32
    return %arg0, %c0_i32, %c0_i32_0 : i32, i32, i32
  }
  func.func @transform_7(%arg0: i32) -> (i32, i32, i32) {
    %c0_i32 = arith.constant 0 : i32
    %c0_i32_0 = arith.constant 0 : i32
    %c0_i32_1 = arith.constant 0 : i32
    return %arg0, %c0_i32, %c0_i32_0 : i32, i32, i32
  }
  func.func @transform_8(%arg0: i32) -> (i32, i32, i32) {
    %c0_i32 = arith.constant 0 : i32
    %c0_i32_0 = arith.constant 0 : i32
    %c0_i32_1 = arith.constant 0 : i32
    return %arg0, %c0_i32, %c0_i32_0 : i32, i32, i32
  }
  func.func @transform_9(%arg0: i32) -> (i32, i32, i32) {
    %c0_i32 = arith.constant 0 : i32
    %c0_i32_0 = arith.constant 0 : i32
    %c0_i32_1 = arith.constant 0 : i32
    return %arg0, %c0_i32, %c0_i32_0 : i32, i32, i32
  }
  func.func @transform_10(%arg0: i32) -> (i32, i32, i32) {
    %c0_i32 = arith.constant 0 : i32
    %c0_i32_0 = arith.constant 0 : i32
    %c0_i32_1 = arith.constant 0 : i32
    return %arg0, %c0_i32, %c0_i32_0 : i32, i32, i32
  }
  func.func @transform_11(%arg0: i32) -> (i32, i32, i32) {
    %c0_i32 = arith.constant 0 : i32
    %c0_i32_0 = arith.constant 0 : i32
    %c0_i32_1 = arith.constant 0 : i32
    return %arg0, %c0_i32, %c0_i32_0 : i32, i32, i32
  }
  func.func @transform_12(%arg0: i32) -> (i32, i32, i32) {
    %c0_i32 = arith.constant 0 : i32
    %c0_i32_0 = arith.constant 0 : i32
    %c0_i32_1 = arith.constant 0 : i32
    return %arg0, %c0_i32, %c0_i32_0 : i32, i32, i32
  }
  func.func @transform_13(%arg0: i32) -> (i32, i32, i32) {
    %c0_i32 = arith.constant 0 : i32
    %c0_i32_0 = arith.constant 0 : i32
    %c0_i32_1 = arith.constant 0 : i32
    return %arg0, %c0_i32, %c0_i32_0 : i32, i32, i32
  }
  func.func @transform_14(%arg0: i32) -> (i32, i32, i32) {
    %c0_i32 = arith.constant 0 : i32
    %c0_i32_0 = arith.constant 0 : i32
    %c0_i32_1 = arith.constant 0 : i32
    return %arg0, %c0_i32, %c0_i32_0 : i32, i32, i32
  }
  func.func @transform_15(%arg0: i32) -> (i32, i32, i32) {
    %c0_i32 = arith.constant 0 : i32
    %c0_i32_0 = arith.constant 0 : i32
    %c0_i32_1 = arith.constant 0 : i32
    return %arg0, %c0_i32, %c0_i32_0 : i32, i32, i32
  }
  func.func @transform_16(%arg0: i32) -> (i32, i32, i32) {
    %c0_i32 = arith.constant 0 : i32
    %c0_i32_0 = arith.constant 0 : i32
    %c0_i32_1 = arith.constant 0 : i32
    return %arg0, %c0_i32, %c0_i32_0 : i32, i32, i32
  }
  func.func @transform_17(%arg0: i32) -> (i32, i32, i32) {
    %c0_i32 = arith.constant 0 : i32
    %c0_i32_0 = arith.constant 0 : i32
    %c0_i32_1 = arith.constant 0 : i32
    return %arg0, %c0_i32, %c0_i32_0 : i32, i32, i32
  }
  func.func @transform_18(%arg0: i32) -> (i32, i32, i32) {
    %c0_i32 = arith.constant 0 : i32
    %c0_i32_0 = arith.constant 0 : i32
    %c0_i32_1 = arith.constant 0 : i32
    return %arg0, %c0_i32, %c0_i32_0 : i32, i32, i32
  }
  func.func @transform_19(%arg0: i32) -> (i32, i32, i32) {
    %c0_i32 = arith.constant 0 : i32
    %c0_i32_0 = arith.constant 0 : i32
    %c0_i32_1 = arith.constant 0 : i32
    return %arg0, %c0_i32, %c0_i32_0 : i32, i32, i32
  }
  func.func @transform_20(%arg0: i32) -> (i32, i32, i32) {
    %c0_i32 = arith.constant 0 : i32
    %c0_i32_0 = arith.constant 0 : i32
    %c0_i32_1 = arith.constant 0 : i32
    return %arg0, %c0_i32, %c0_i32_0 : i32, i32, i32
  }
}

</mosaic_0001>

<bundles_post_ra>
// kernel: biencoder_forward.1
= control target key start
LH: loop header
LB: loop body
LE: loop exit
PB: predicated region body
PF: predicated region fallthrough
CT: control target
= control target key end

     0   :  { %s3743_s0 = inlined_call_operand.vmem [shape: s32[2,32,1], index: 0, kind: input, shape index: {}]   ;;  %s3744_s1 = inlined_call_operand.vmem [shape: s32[2,32,1], index: 1, kind: input, shape index: {}]   ;;  %s3745_s2 = inlined_call_operand.vmem [shape: f32[2,1,32], index: 2, kind: input, shape index: {}]   ;;  %s3746_s3 = inlined_call_operand.vmem [shape: f32[2,64,128], index: 3, kind: input, shape index: {}]   ;;  %s3747_s4 = inlined_call_operand.vmem [shape: f32[2,2,128], index: 4, kind: input, shape index: {}]   ;;  %s3748_s5 = inlined_call_operand.vmem [shape: f32[2,8,128], index: 5, kind: input, shape index: {}]   ;;  %s3749_s6 = inlined_call_operand.vmem [shape: bf16[2,128,256], index: 6, kind: input, shape index: {}]   ;;  %s3750_s7 = inlined_call_operand.vmem [shape: f32[2,1,256], index: 7, kind: input, shape index: {}]   ;;  %s3751_s8 = inlined_call_operand.hbm [shape: bf16[2,128,128], index: 8, kind: input, shape index: {}]   ;;  %s3752_s9 = inlined_call_operand.vmem [shape: f32[2,1,128], index: 9, kind: input, shape index: {}]   ;;  %s3753_s10 = inlined_call_operand.hbm [shape: bf16[2,128,128], index: 10, kind: input, shape index: {}]   ;;  %s3754_s11 = inlined_call_operand.vmem [shape: f32[2,1,128], index: 11, kind: input, shape index: {}]   ;;  %s3755_s12 = inlined_call_operand.vmem [shape: f32[2,1,128], index: 12, kind: input, shape index: {}]   ;;  %s3756_s13 = inlined_call_operand.vmem [shape: f32[2,1,128], index: 13, kind: input, shape index: {}]   ;;  %s3757_s14 = inlined_call_operand.hbm [shape: bf16[2,128,128], index: 14, kind: input, shape index: {}]   ;;  %s3758_s15 = inlined_call_operand.vmem [shape: f32[2,1,128], index: 15, kind: input, shape index: {}]   ;;  %s3759_s16 = inlined_call_operand.hbm [shape: bf16[2,128,128], index: 16, kind: input, shape index: {}]   ;;  %s3760_s17 = inlined_call_operand.vmem [shape: f32[2,1,128], index: 17, kind: input, shape index: {}]   ;;  %s3761_s18 = inlined_call_operand.vmem [shape: f32[2,1,128], index: 18, kind: input, shape index: {}]   ;;  %s3762_s19 = inlined_call_operand.vmem [shape: f32[2,1,128], index: 19, kind: input, shape index: {}]   ;;  %s3763_s20 = inlined_call_operand.vmem [shape: f32[2,4,128], index: 20, kind: output, shape index: {}]  }
   0x1   :  { %3772 = sst [smem:[#allocation15_spill]] %s3743_s0 }
   0x2   :  { %3773 = sst [smem:[#allocation16_spill]] %s3744_s1 }
   0x3   :  { %3774 = sst [smem:[#allocation17_spill]] %s3745_s2 }
   0x4   :  { %3775 = sst [smem:[#allocation18_spill]] %s3746_s3 }
   0x5   :  { %3776 = sst [smem:[#allocation19_spill]] %s3747_s4 }
   0x6   :  { %3777 = sst [smem:[#allocation20_spill]] %s3751_s8 }
   0x7   :  { %3778 = sst [smem:[#allocation21_spill]] %s3753_s10 }
   0x8   :  { %3779 = sst [smem:[#allocation22_spill]] %s3755_s12 }
   0x9   :  { %3780 = sst [smem:[#allocation23_spill]] %s3756_s13 }
   0xa   :  { %3781 = sst [smem:[#allocation24_spill]] %s3758_s15 }
   0xb   :  { %3782 = sst [smem:[#allocation25_spill]] %s3760_s17 }
   0xc   :  { %3783 = sst [smem:[#allocation26_spill]] %s3761_s18 }
   0xd   :  { %3784 = sst [smem:[#allocation27_spill]] %s3762_s19 }
   0xe   :  { %3785 = sst [smem:[#allocation28_spill]] %s3763_s20 }
   0xf   :  { %25 = vsyncpa [#allocation3], 0 }
  0x10   :  { %27 = vsyncpa [#allocation3 + $0x1], 0 }
  0x11   :  { %28 = vsyncpa [#allocation5], 0 }
  0x12   :  { %30 = vsyncpa [#allocation5 + $0x1], 0 }
  0x13   :  { %31 = vsyncpa [#allocation8], 0 }
  0x14   :  { %33 = vsyncpa [#allocation8 + $0x1], 0  ;;  %s3204_s1 = smov 0   ;;  %s3206_s22 = smov 0  }
  0x15   :  { %s3208_s23 = smov 0   ;;  %s3210_s24 = smov 0  }
  0x16 LB: > { %3786 = sst [smem:[#allocation12_spill]] %s3084_s23  ;;  %s3223_s2 = sadd.s32 4294967295, %s3088_s24   ;;  %s3088_s24 = sphi %s3210_s24, %s3813_s24   ;;  %s3084_s23 = sphi %s3208_s23, %s3815_s23   ;;  %s3080_s22 = sphi %s3206_s22, %s3817_s22   ;;  %s3076_s1 = sphi %s3204_s1, %s3816_s1  }
  0x17   : > { %s3226_s25 = sadd.s32 1, %s3088_s24   ;;  %s254_s26 = sadd.s32 1, %s3084_s23 }
  0x18   : > { %3787 = sst [smem:[#allocation13_spill]] %s3226_s25  ;;  %s251_s3 = ssub.s32 %s3088_s24, %s3226_s25 }
  0x19   : > { %p252_p0 = scmp.eq.s32.totalorder %s251_s3, 0  ;;  %p261_p1 = scmp.ne.s32.totalorder %s3084_s23, %s3080_s22 }
  0x1a   : > { %p262_p2 = scmp.eq.s32.totalorder %s3088_s24, 0  ;;  %p267_p3 = scmp.ne.s32.totalorder %s3080_s22, %s3076_s1 }
  0x1b   : > { %s3236_s27 = scalar_select %p252_p0, %s3084_s23, %s254_s26  }
  0x1c   : > { %p263_p4 = por %p262_p2, %p261_p1  ;;  %p268_p5 = scmp.eq.s32.totalorder %s3223_s2, 0 }
  0x1d   : > { %3788 = sst [smem:[#allocation14_spill]] %s3236_s27  ;;  %p2820_p6 = scmp.lt.s32.totalorder %s3088_s24, 2 }
  0x1e   : > { %p3240_p7 = por %p268_p5, %p267_p3  ;;  %s3245_s4 = sand.u32 1, %s3084_s23  }
  0x1f   : > { %s3248_s29 = sshll.u32 %s3245_s4, 6  ;;  %s3251_s30 = sshll.u32 %s3088_s24, 10 }
  0x20   : > { %s3789_s28 = scalar_select %p3240_p7, 1, 0 }
  0x21   : > { %p3253_p8 = pnand %p2820_p6, %p263_p4  ;;  %s689_s21 = sand.u32 1, %s3088_s24  }
  0x22   : > { %s3791_s10 = sld [smem:[#allocation21_spill]]  ;;  %s693_s27 = scalar_lea.vmem [#allocation4], %s3248_s29 }
  0x23   : > { %s700_s23 = sshll.u32 %s693_s27, 4  ;;  %s3269_s25 = scalar_lea.sflag [#allocation5], %s689_s21  ;;  %s3266_s23 = int_to_ptr.vmem [resolvable:$true] %s700_s23 }
  0x24   : > { %p3275_p12 = pneg %p3253_p8 }
  0x28   : > { %s3262_s26 = scalar_lea.hbm %s3791_s10, %s3251_s30  ;;  %s2931_s27 = scalar_lea.hbm %s3791_s10, 2048 }
  0x29   : > { %s2926_s20 = scalar_lea.hbm %s3262_s26, 1024  ;;  %p2932_p1 = scmp.lt.u32.totalorder %s3262_s26, %s3791_s10 }
  0x2a   : > { %p2927_p11 = scmp.ne.s32.totalorder %s3262_s26, %s2926_s20  ;;  %p2933_p2 = scmp.lt.u32.totalorder %s2931_s27, %s2926_s20 }
  0x2b   : > { %p2935_p4 = scmp.lt.u32.totalorder %s2926_s20, %s3262_s26 }
  0x2c   : > { %p2929_p13 = pnand %p3275_p12, %p2927_p11  ;;  %p2934_p3 = por %p2933_p2, %p2932_p1 }
  0x2e   : > { %p2930_p0 = pneg %p2929_p13  ;;  %p2936_p5 = por %p2935_p4, %p2934_p3 }
  0x30   : > { %p2937_p6 = pnand %p2936_p5, %p2930_p0 }
  0x32   : > { %2940 = shalt.err (!%p2937_p6)
}
  0x33   : > { %s2941_s21 = scalar_lea.vmem %s3266_s23, 1024  ;;  %s3090_s1 = smov [#allocation4]  }
  0x34   : > { %p2942_p11 = scmp.ne.s32.totalorder %s3266_s23, %s2941_s21  ;;  %s2946_s3 = sshll.u32 %s3090_s1, 4  ;;  %s2947_s3 = int_to_ptr.vmem [resolvable:$false] %s2946_s3 }
  0x35   : > { %s2948_s17 = scalar_lea.vmem %s2947_s3, 2048  ;;  %p2949_p10 = scmp.lt.s32.totalorder %s3266_s23, %s2947_s3 }
  0x36   : > { %p2944_p13 = pnand %p2942_p11, %p3275_p12  ;;  %p2950_p7 = scmp.lt.s32.totalorder %s2948_s17, %s2941_s21 }
  0x38   : > { %p2945_p9 = pneg %p2944_p13  ;;  %p2951_p1 = por %p2950_p7, %p2949_p10 }
  0x3a   : > { %p2952_p2 = pnand %p2951_p1, %p2945_p9 }
  0x3c   : > { %2955 = shalt.err (!%p2952_p2)
}
  0x3d   : > { %s3768_s18 = smov 64   ;;  %s3770_s20 = smov 4  }
  0x3e   : > { %2813 = dma.hbm_to_vmem [thread:$0]  (!%p3253_p8), %s3262_s26, 1024, %s3266_s23, %s3269_s25, %s3768_s18, %s3768_s18, %s3770_s20  }
  0x3f   : > { %p3793_p7 = scmp.lt.s32.totalorder %s3088_s24, 3  ;;  %p3794_p9 = scmp.ge.s32.totalorder %s3088_s24, 1 }
  0x40   : > { %s3796_s8 = sld [smem:[#allocation20_spill]]  ;;  %s666_s17 = scalar_lea.vmem [#allocation2], %s3248_s29 }
  0x41   : > { %p3306_p10 = pnand %p3794_p9, %p3793_p7  ;;  %s673_s10 = sshll.u32 %s666_s17, 4  ;;  %s3317_s10 = int_to_ptr.vmem [resolvable:$true] %s673_s10 }
  0x42   : > { %s3323_s24 = scalar_lea.hbm %s3757_s14, %s3251_s30  ;;  %s663_s18 = scalar_lea.sflag [#allocation3], %s3245_s4 }
  0x43   : > { %s3795_s27 = scalar_select %p3306_p10, 1, 0 }
  0x46   : > { %s3314_s3 = scalar_lea.hbm %s3796_s8, %s3251_s30  ;;  %s2961_s15 = scalar_lea.hbm %s3796_s8, 2048 }
  0x47   : > { %s2956_s20 = scalar_lea.hbm %s3314_s3, 1024  ;;  %p2962_p5 = scmp.lt.u32.totalorder %s3314_s3, %s3796_s8 }
  0x48   : > { %p2957_p0 = scmp.ne.s32.totalorder %s3314_s3, %s2956_s20  ;;  %p2963_p6 = scmp.lt.u32.totalorder %s2961_s15, %s2956_s20 }
  0x49   : > { %p2965_p13 = scmp.lt.u32.totalorder %s2956_s20, %s3314_s3 }
  0x4a   : > { %p2959_p3 = pnand %p2957_p0, %p3275_p12  ;;  %p2964_p11 = por %p2963_p6, %p2962_p5 }
  0x4c   : > { %p2960_p4 = pneg %p2959_p3  ;;  %p2966_p1 = por %p2965_p13, %p2964_p11 }
  0x4e   : > { %p2967_p2 = pnand %p2966_p1, %p2960_p4 }
  0x50   : > { %2970 = shalt.err (!%p2967_p2)
}
  0x51   : > { %s2971_s17 = scalar_lea.vmem %s3317_s10, 1024  ;;  %s3093_s23 = smov [#allocation2]  }
  0x52   : > { %p2972_p7 = scmp.ne.s32.totalorder %s3317_s10, %s2971_s17  ;;  %s2976_s26 = sshll.u32 %s3093_s23, 4  ;;  %s2977_s26 = int_to_ptr.vmem [resolvable:$false] %s2976_s26 }
  0x53   : > { %s2978_s12 = scalar_lea.vmem %s2977_s26, 2048  ;;  %p2979_p3 = scmp.lt.s32.totalorder %s3317_s10, %s2977_s26 }
  0x54   : > { %p2974_p9 = pnand %p2972_p7, %p3275_p12  ;;  %p2980_p10 = scmp.lt.s32.totalorder %s2978_s12, %s2971_s17 }
  0x56   : > { %p2975_p0 = pneg %p2974_p9  ;;  %p2981_p5 = por %p2980_p10, %p2979_p3 }
  0x58   : > { %p2982_p6 = pnand %p2981_p5, %p2975_p0 }
  0x5a   : > { %2985 = shalt.err (!%p2982_p6)
}
  0x5b   : > { %s3797_s13 = smov 4   ;;  %s3798_s15 = smov 64  }
  0x5c   : > { %2810 = dma.hbm_to_vmem [thread:$0]  (!%p3253_p8), %s3314_s3, 1024, %s3317_s10, %s663_s18, %s3798_s15, %s3798_s15, %s3797_s13  }
  0x5d   : > { %s732_s20 = scalar_lea.vmem [#allocation6], %s3248_s29  ;;  %s2986_s1 = scalar_lea.hbm %s3323_s24, 1024 }
  0x5e   : > { %s739_s21 = sshll.u32 %s732_s20, 4  ;;  %p2987_p10 = scmp.ne.s32.totalorder %s3323_s24, %s2986_s1  ;;  %s3353_s21 = int_to_ptr.vmem [resolvable:$true] %s739_s21 }
  0x5f   : > { %s2991_s26 = scalar_lea.hbm %s3757_s14, 2048  ;;  %p2992_p13 = scmp.lt.u32.totalorder %s3323_s24, %s3757_s14 }
  0x60   : > { %p2989_p4 = pnand %p2987_p10, %p3275_p12  ;;  %p2993_p1 = scmp.lt.u32.totalorder %s2991_s26, %s2986_s1 }
  0x61   : > { %p2995_p7 = scmp.lt.u32.totalorder %s2986_s1, %s3323_s24 }
  0x62   : > { %p2990_p11 = pneg %p2989_p4  ;;  %p2994_p2 = por %p2993_p1, %p2992_p13 }
  0x64   : > { %p2996_p9 = por %p2995_p7, %p2994_p2 }
  0x66   : > { %p2997_p0 = pnand %p2996_p9, %p2990_p11 }
  0x68   : > { %3000 = shalt.err (!%p2997_p0)
}
  0x69   : > { %s3001_s10 = scalar_lea.vmem %s3353_s21, 1024  ;;  %s3094_s18 = smov [#allocation6]  }
  0x6a   : > { %p3002_p3 = scmp.ne.s32.totalorder %s3353_s21, %s3001_s10  ;;  %s3006_s3 = sshll.u32 %s3094_s18, 4  ;;  %s3007_s3 = int_to_ptr.vmem [resolvable:$false] %s3006_s3 }
  0x6b   : > { %s3008_s8 = scalar_lea.vmem %s3007_s3, 2048  ;;  %p3009_p10 = scmp.lt.s32.totalorder %s3353_s21, %s3007_s3 }
  0x6c   : > { %p3004_p5 = pnand %p3002_p3, %p3275_p12  ;;  %p3010_p4 = scmp.lt.s32.totalorder %s3008_s8, %s3001_s10 }
  0x6e   : > { %p3005_p6 = pneg %p3004_p5  ;;  %p3011_p13 = por %p3010_p4, %p3009_p10 }
  0x70   : > { %p3012_p1 = pnand %p3011_p13, %p3005_p6 }
  0x72   : > { %3015 = shalt.err (!%p3012_p1)
}
  0x73   : > { %2816 = dma.hbm_to_vmem [thread:$0]  (!%p3253_p8), %s3323_s24, 1024, %s3353_s21, %s3269_s25, %s3798_s15, %s3798_s15, %s3797_s13  }
  0x74   : > { %s3384_s17 = scalar_lea.hbm %s3759_s16, %s3251_s30  ;;  %s759_s23 = scalar_lea.vmem [#allocation7], %s3248_s29 }
  0x75   : > { %s766_s26 = sshll.u32 %s759_s23, 4  ;;  %s756_s12 = scalar_lea.sflag [#allocation8], %s3245_s4  ;;  %s3387_s26 = int_to_ptr.vmem [resolvable:$true] %s766_s26 }
  0x76   : > { %s3016_s10 = scalar_lea.hbm %s3384_s17, 1024  ;;  %s3021_s21 = scalar_lea.hbm %s3759_s16, 2048 }
  0x77   : > { %p3017_p11 = scmp.ne.s32.totalorder %s3384_s17, %s3016_s10  ;;  %p3022_p9 = scmp.lt.u32.totalorder %s3384_s17, %s3759_s16 }
  0x78   : > { %p3023_p0 = scmp.lt.u32.totalorder %s3021_s21, %s3016_s10  ;;  %p3025_p5 = scmp.lt.u32.totalorder %s3016_s10, %s3384_s17 }
  0x79   : > { %p3019_p2 = pnand %p3017_p11, %p3275_p12 }
  0x7a   : > { %p3024_p3 = por %p3023_p0, %p3022_p9 }
  0x7b   : > { %p3020_p7 = pneg %p3019_p2 }
  0x7c   : > { %p3026_p6 = por %p3025_p5, %p3024_p3 }
  0x7e   : > { %p3027_p10 = pnand %p3026_p6, %p3020_p7 }
  0x80   : > { %3030 = shalt.err (!%p3027_p10)
}
  0x81   : > { %s3031_s29 = scalar_lea.vmem %s3387_s26, 1024  ;;  %s3095_s3 = smov [#allocation7]  }
  0x82   : > { %p3032_p4 = scmp.ne.s32.totalorder %s3387_s26, %s3031_s29  ;;  %s3036_s8 = sshll.u32 %s3095_s3, 4  ;;  %s3037_s8 = int_to_ptr.vmem [resolvable:$false] %s3036_s8 }
  0x83   : > { %s3038_s20 = scalar_lea.vmem %s3037_s8, 2048  ;;  %p3039_p11 = scmp.lt.s32.totalorder %s3387_s26, %s3037_s8 }
  0x84   : > { %p3034_p13 = pnand %p3032_p4, %p3275_p12  ;;  %p3040_p2 = scmp.lt.s32.totalorder %s3038_s20, %s3031_s29 }
  0x86   : > { %p3035_p1 = pneg %p3034_p13  ;;  %p3041_p9 = por %p3040_p2, %p3039_p11 }
  0x88   : > { %p3042_p0 = pnand %p3041_p9, %p3035_p1 }
  0x8a   : > { %3045 = shalt.err (!%p3042_p0)
}
  0x8b   : > { %2819 = dma.hbm_to_vmem [thread:$0]  (!%p3253_p8), %s3384_s17, 1024, %s3387_s26, %s756_s12, %s3798_s15, %s3798_s15, %s3797_s13  }
  0x8c   : > { %p3799_p12 = scmp.ne.s32.totalorder %s3795_s27, 0 }
  0x8d   : > { %s798_s19 = sand.u32 (!%p3799_p12), 1, %s3080_s22   ;;  %p3800_p7 = scmp.ne.s32.totalorder (!%p3799_p12), %s3789_s28, 0 }
  0x8e   : > { %796 = sbr.rel (%p3799_p12) target bundleno = 2850 (0xb22), region = 100  ;;  %s2514_s1 = sshll.u32 (!%p3799_p12), %s798_s19, 6 }
  0x8f   : > { %s799_s23 = scalar_lea.sflag (!%p3799_p12), [#allocation3], %s798_s19  ;;  %s3419_s10 = scalar_lea.vmem (!%p3799_p12), [#allocation2], %s2514_s1 }
  0x95   : > { %3063 = dma.done.wait (%p3800_p7), %s799_s23, 1024  }
  0x96   : > { %3065 = vsyncadd (%p3800_p7), %s799_s23, 4294966272  ;;  %s807_s4 = sand.u32 1, %s3223_s2   ;;  %s3426_s13 = scalar_lea.vmem [#allocation4], %s2514_s1 }
  0x97   : > { %s808_s0 = scalar_lea.sflag [#allocation5], %s807_s4 }
  0x98   : > { %3067 = dma.done.wait (%p3800_p7), %s808_s0, 2048  }
  0x99   : > { %3069 = vsyncadd (%p3800_p7), %s808_s0, 4294965248  ;;  %s3432_s27 = scalar_lea.vmem [#allocation6], %s2514_s1  ;;  %s826_s15 = scalar_lea.sflag [#allocation8], %s798_s19 }
  0x9a   : > { %s3434_s17 = scalar_lea.vmem [#allocation7], %s2514_s1 }
  0x9b   : > { %3071 = dma.done.wait (%p3800_p7), %s826_s15, 1024  }
  0x9c   : > { %3073 = vsyncadd (%p3800_p7), %s826_s15, 4294966272  ;;  %p959_p8 = scmp.lt.s32.totalorder %s3223_s2, 1  ;;  %v3096_v0 = vmov 0   ;;  %s3801_s28 = sld [smem:[#allocation15_spill]]  ;;  %v3097_v30 = vmov 0.0   ;;  %v1027_v38 = vlaneseq  ;;  %vm1103_vm4 = vcmask 523264  }
  0x9d   : > { %2859 = vset.pattern.permute.xlu1 %v3096_v0  ;;  %2858 = vset.pattern.permute.xlu0 %v3096_v0  ;;  %s3802_s29 = sld [smem:[#allocation16_spill]]  ;;  %s3803_s19 = sld [smem:[#allocation18_spill]]  ;;  %v2872_v45 = vld [vmem:[%s3419_s10] sm:$0xff]   ;;  %v2876_v49 = vld [vmem:[%s3419_s10 + $0x8] sm:$0xff]   ;;  %v2880_v50 = vld [vmem:[%s3419_s10 + $0x10] sm:$0xff]   ;;  %vm3098_vm9 = vmmov 0  }
  0x9e   : > { %s3819_s2 = smov (!%p959_p8, %s3223_s2), 1  ;;  %1348 = vmatprep.mubr.bf16.mxu1 %v3096_v0  ;;  %v3492_v39 = vand.u32 127, %v1027_v38  ;;  %v2884_v53 = vld [vmem:[%s3419_s10 + $0x18] sm:$0xff]   ;;  %v2888_v56 = vld [vmem:[%s3419_s10 + $0x20] sm:$0xff]   ;;  %v2889_v57 = vld [vmem:[%s3419_s10 + $0x28] sm:$0xff]   ;;  %s3804_s24 = sld [smem:[#allocation19_spill]] }
  0x9f   : > { %s2607_s26 = sshll.u32 %s3819_s2, 5  ;;  %s2609_s12 = sshll.u32 %s3819_s2, 6  ;;  %v2890_v58 = vld [vmem:[%s3419_s10 + $0x30] sm:$0xff]   ;;  %v2891_v59 = vld [vmem:[%s3419_s10 + $0x38] sm:$0xff]   ;;  %vm1405_vm14 = vcmask 1041409   ;;  %vm1408_vm15 = vcmask 1042434  }
  0xa0   : > { %s2610_s23 = sshll.u32 %s3819_s2, 7  ;;  %s3805_s0 = sld [smem:[#allocation17_spill]] }
  0xa1   : > { %s3476_s15 = scalar_lea.vmem %s3749_s6, %s2610_s23  ;;  %s999_s25 = scalar_lea.vmem %s3754_s11, %s3819_s2 }
  0xa2   : > { %s963_s21 = scalar_lea.vmem %s3801_s28, %s2607_s26  ;;  %v2860_v25 = vld [vmem:[%s3476_s15 + $0x4] ss:$8 sps:$4 sm:$0xff]   ;;  %v2862_v26 = vld [vmem:[%s3476_s15] ss:$8 sps:$4 sm:$0xff]   ;;  %v2863_v27 = vld [vmem:[%s3476_s15 + $0x14] ss:$8 sps:$4 sm:$0xff]  }
  0xa3   : > { %s968_s3 = scalar_lea.vmem %s3802_s29, %s2607_s26  ;;  %s3458_s1 = scalar_lea.vmem %s3803_s19, %s2609_s12  ;;  %v1025_v1 = vld [vmem:[%s963_s21 + $0x10] sm:$0xff]  ;;  %v1023_v2 = vld [vmem:[%s963_s21] sm:$0xff]  ;;  %v1026_v3 = vld [vmem:[%s963_s21 + $0x18] sm:$0xff]  ;;  %1316 = vmatprep.subr.bf16.mxu1 %v2860_v25 }
  0xa4   : > { %1036 = vperm.xlu1 %2859, %v1025_v1   ;;  %1030 = vperm.xlu0 %2858, %v1023_v2   ;;  %v1024_v4 = vld [vmem:[%s963_s21 + $0x8] sm:$0xff]  ;;  %v1061_v6 = vld [vmem:[%s968_s3] sm:$0xff]  ;;  %v1064_v7 = vld [vmem:[%s968_s3 + $0x18] sm:$0xff]  ;;  %s2524_s26 = sshll.u32 %s3819_s2, 1  ;;  %s2525_s21 = sshll.u32 %s3819_s2, 3 }
  0xa5   : > { %v1062_v5 = vld [vmem:[%s968_s3 + $0x8] sm:$0xff]  ;;  %vm1065_vm1 = vcmp.eq.s32.totalorder %v1061_v6, 0  ;;  %v1063_v8 = vld [vmem:[%s968_s3 + $0x10] sm:$0xff]  ;;  %v1053_v9 = vld [vmem:[%s3458_s1] sm:$0xff]  ;;  %vm1068_vm2 = vcmp.eq.s32.totalorder %v1064_v7, 0  ;;  %1317 = vmatpush1.bf16.msra.mxu1 %v2862_v26  ;;  %s980_s28 = scalar_lea.vmem %s3804_s24, %s2524_s26  ;;  %s984_s10 = scalar_lea.vmem %s3748_s5, %s2525_s21 }
  0xa6   : > { %vm1066_vm0 = vcmp.eq.s32.totalorder %v1062_v5, 0  ;;  %v1054_v10 = vld [vmem:[%s3458_s1 + $0x8] sm:$0xff]  ;;  %v1055_v11 = vld [vmem:[%s3458_s1 + $0x10] sm:$0xff]  ;;  %v1071_v13 = vsel %vm1065_vm1, 1, %v3096_v0  ;;  %v1056_v15 = vld [vmem:[%s3458_s1 + $0x18] sm:$0xff]  ;;  %vm1067_vm3 = vcmp.eq.s32.totalorder %v1063_v8, 0  ;;  %1318 = vmatprep.subr.bf16.mxu1 %v2863_v27  ;;  %s993_s8 = scalar_lea.vmem %s3750_s7, %s2524_s26 }
  0xa7   : > { %v1072_v12 = vsel %vm1066_vm0, 1, %v3096_v0  ;;  %v2783_v14 = vpack.c.bf16 %v1054_v10, %v1053_v9  ;;  %v2787_v16 = vpack.c.bf16 %v1056_v15, %v1055_v11  ;;  %v1057_v17 = vld [vmem:[%s3458_s1 + $0x20] sm:$0xff]  ;;  %v1058_v18 = vld [vmem:[%s3458_s1 + $0x28] sm:$0xff]  ;;  %v1074_v20 = vsel %vm1068_vm2, 1, %v3096_v0  ;;  %v1059_v22 = vld [vmem:[%s3458_s1 + $0x30] sm:$0xff]  ;;  %s3812_s18 = sld [smem:[#allocation28_spill]] }
  0xa8   : > { %1039 = vperm.xlu1 %2859, %v1026_v3   ;;  %1033 = vperm.xlu0 %2858, %v1024_v4   ;;  %v2791_v19 = vpack.c.bf16 %v1058_v18, %v1057_v17  ;;  %v1073_v21 = vsel %vm1067_vm3, 1, %v3096_v0  ;;  %v1060_v23 = vld [vmem:[%s3458_s1 + $0x38] sm:$0xff]  ;;  %v2866_v29 = vld [vmem:[%s3476_s15 + $0x24] ss:$8 sps:$4 sm:$0xff]   ;;  %v2868_v31 = vld [vmem:[%s3476_s15 + $0x20] ss:$8 sps:$4 sm:$0xff]   ;;  %s996_s1 = scalar_lea.vmem %s3752_s9, %s3819_s2 }
  0xa9   : > { %2784 = vmatprep.subr.bf16.mxu0 %v2783_v14  ;;  %v2795_v24 = vpack.c.bf16 %v1060_v23, %v1059_v22  ;;  %v2865_v28 = vld [vmem:[%s3476_s15 + $0x10] ss:$8 sps:$4 sm:$0xff]   ;;  %v2869_v32 = vld [vmem:[%s3476_s15 + $0x34] ss:$8 sps:$4 sm:$0xff]   ;;  %v2873_v34 = vld [vmem:[%s3476_s15 + $0x44] ss:$8 sps:$4 sm:$0xff]  }
  0xaa   : > { %2786 = vmatpush3.bf16.msra.mxu0 %v2783_v14  ;;  %1319 = vmatpush1.bf16.msra.mxu1 %v2865_v28  ;;  %v2871_v33 = vld [vmem:[%s3476_s15 + $0x30] ss:$8 sps:$4 sm:$0xff]   ;;  %v2875_v35 = vld [vmem:[%s3476_s15 + $0x40] ss:$8 sps:$4 sm:$0xff]   ;;  %v2877_v36 = vld [vmem:[%s3476_s15 + $0x54] ss:$8 sps:$4 sm:$0xff]  }
  0xab   : > { %2788 = vmatprep.subr.bf16.mxu0 %v2787_v16  ;;  %1320 = vmatprep.subr.bf16.mxu1 %v2866_v29  ;;  %v2879_v37 = vld [vmem:[%s3476_s15 + $0x50] ss:$8 sps:$4 sm:$0xff]   ;;  %v2881_v51 = vld [vmem:[%s3476_s15 + $0x64] ss:$8 sps:$4 sm:$0xff]   ;;  %v2883_v52 = vld [vmem:[%s3476_s15 + $0x60] ss:$8 sps:$4 sm:$0xff]  }
  0xac   : > { %1079 = vperm.xlu1 %2859, %v1072_v12   ;;  %1076 = vperm.xlu0 %2858, %v1071_v13   ;;  %v2885_v54 = vld [vmem:[%s3476_s15 + $0x74] ss:$8 sps:$4 sm:$0xff]   ;;  %v2887_v55 = vld [vmem:[%s3476_s15 + $0x70] ss:$8 sps:$4 sm:$0xff]   ;;  %v2534_v62 = vld [vmem:[%s980_s28] ss:$0 sm:$0xff]  ;;  %s971_s15 = scalar_lea.vmem %s3805_s0, %s3819_s2 }
  0xad   : > { %v2535_v63 = vld [vmem:[%s980_s28 + $0x1] ss:$0 sm:$0xff]  ;;  %vm1411_vm0 = vcmask 1043459   ;;  %s3806_s28 = sld [smem:[#allocation22_spill]] }
  0xae   : > { %2790 = vmatpush3.bf16.msra.mxu0 %v2787_v16  ;;  %1321 = vmatpush1.bf16.msra.mxu1 %v2868_v31  ;;  %v1201_v5 = vld [vmem:[%s984_s10] sm:$0xff]  ;;  %s3807_s10 = sld [smem:[#allocation23_spill]] }
  0xaf   : > { %2792 = vmatprep.subr.bf16.mxu0 %v2791_v19  ;;  %1322 = vmatprep.subr.bf16.mxu1 %v2869_v32 }
  0xb0   : > { %1085 = vperm.xlu1 %2859, %v1074_v20   ;;  %1082 = vperm.xlu0 %2858, %v1073_v21  }
  0xb2   : > { %2794 = vmatpush3.bf16.msra.mxu0 %v2791_v19  ;;  %1323 = vmatpush1.bf16.msra.mxu1 %v2871_v33 }
  0xb3   : > { %2796 = vmatprep.subr.bf16.mxu0 %v2795_v24  ;;  %1324 = vmatprep.subr.bf16.mxu1 %v2873_v34  ;;  %s1002_s21 = scalar_lea.vmem %s3806_s28, %s3819_s2  ;;  %s2529_s28 = sshll.u32 %s3819_s2, 2 }
  0xb4   : > { %s1005_s29 = scalar_lea.vmem %s3807_s10, %s3819_s2  ;;  %s1021_s10 = scalar_lea.vmem %s3812_s18, %s2529_s28 }
  0xb6   : > { %2798 = vmatpush3.bf16.msra.mxu0 %v2795_v24  ;;  %1325 = vmatpush1.bf16.msra.mxu1 %v2875_v35 }
  0xb7   : > { %2687 = vmatprep.subr.bf16.mxu0 %v3097_v30  ;;  %1326 = vmatprep.subr.bf16.mxu1 %v2877_v36 }
  0xba   : > { %1327 = vmatpush1.bf16.msra.mxu1 %v2879_v37  ;;  %v1227_v37 = vshrl.u32 %v1027_v38, 7 }
  0xbb   : > { %1328 = vmatprep.subr.bf16.mxu1 %v2881_v51 }
  0xbe   : > { %1329 = vmatpush1.bf16.msra.mxu1 %v2883_v52 }
  0xbf   : > { %1330 = vmatprep.subr.bf16.mxu1 %v2885_v54 }
  0xc2   : > { %1331 = vmatpush1.bf16.msra.mxu1 %v2887_v55 }
  0xc3   : > { %2723 = vmatprep.subr.bf16.mxu1 %v3097_v30 }
 0x123   : > { %v1037_v40 = vpop.permute.xlu1 %1036  ;;  %v1031_v41 = vpop.permute.xlu0 %1030 }
 0x124   : > { %vm1041_vm5 = vcmp.eq.s32.totalorder %v1031_v41, %v3492_v39  ;;  %vm1043_vm6 = vcmp.eq.s32.totalorder %v1037_v40, %v3492_v39  ;;  %v1228_v40 = vsub.s32 0, %v1227_v37  ;;  %v1224_v41 = vld [vmem:[%s993_s8] sm:$0x3]  ;;  %s3808_s8 = sld [smem:[#allocation24_spill]] }
 0x125   : > { %v2530_v42 = vsel %vm1041_vm5, 1.0, %v3097_v30  ;;  %v2532_v46 = vsel %vm1043_vm6, 1.0, %v3097_v30  ;;  %vm1582_vm5 = vcmask 261120   ;;  %vm1766_vm6 = vcmask 1043456  }
 0x126   : > { %2681 = vmatprep.mubr.msk.f32.mxu0 %vm1103_vm4, %v2530_v42  ;;  %v1232_v42 = vsub.s32 1, %v1227_v37 }
 0x127   : > { %v1040_v43 = vpop.permute.xlu1 %1039  ;;  %v1034_v44 = vpop.permute.xlu0 %1033 }
 0x128   : > { %vm1044_vm7 = vcmp.eq.s32.totalorder %v1040_v43, %v3492_v39  ;;  %vm1042_vm8 = vcmp.eq.s32.totalorder %v1034_v44, %v3492_v39  ;;  %v1229_v43 = vrot.slane %v1224_v41, %v1228_v40  ;;  %v1233_v44 = vrot.slane %v1224_v41, %v1232_v42 }
 0x129   : > { %v2531_v47 = vsel %vm1042_vm8, 1.0, %v3097_v30  ;;  %v2533_v48 = vsel %vm1044_vm7, 1.0, %v3097_v30  ;;  %vm1738_vm7 = vcmp.lt.s32.totalorder %v3492_v39, 32 }
 0x12a   : > { %2682 = vmatmul.mubr.msk.f32.vlgmr.msra.gmra.mrb[0].mxu0 %vm1103_vm4, %v2531_v47  ;;  %s1008_s20 = scalar_lea.vmem %s3808_s8, %s3819_s2 }
 0x12b   : > { %2684 = vmatprep.mubr.msk.f32.mxu0 %vm1103_vm4, %v2532_v46  ;;  %2688 = vmatpush3.bf16.msra.mxu0 %v2872_v45  ;;  %v1080_v60 = vpop.permute.xlu1 %1079  ;;  %v1077_v61 = vpop.permute.xlu0 %1076 }
 0x12c   : > { %2689 = vmatprep.subr.bf16.mxu0 %v3097_v30  ;;  %vm1088_vm10 = vcmp.eq.s32.totalorder %v1080_v60, 1  ;;  %vm1087_vm11 = vcmp.eq.s32.totalorder %v1077_v61, 1 }
 0x12d   : > { %v1100_v3 = vsel %vm1088_vm10, %v2534_v62, %v2535_v63  ;;  %v1099_v7 = vsel %vm1087_vm11, %v2534_v62, %v2535_v63 }
 0x12e   : > { %2685 = vmatmul.mubr.msk.f32.gmra.mrb[2].mxu0 %vm1103_vm4, %v2533_v48  ;;  %vm1567_vm4 = vcmask 257024  }
 0x12f   : > { %2690 = vmatpush3.bf16.msra.mxu0 %v2876_v49  ;;  %2703 = vmatprep.mubr.msk.bf16.mxu0 %vm3098_vm9, %v3097_v30  ;;  %v1086_v1 = vpop.permute.xlu1 %1085  ;;  %v1083_v2 = vpop.permute.xlu0 %1082 }
 0x130   : > { %2691 = vmatprep.subr.bf16.mxu0 %v3097_v30  ;;  %vm1090_vm12 = vcmp.eq.s32.totalorder %v1086_v1, 1  ;;  %vm1089_vm13 = vcmp.eq.s32.totalorder %v1083_v2, 1  ;;  %v2556_v1 = vld [vmem:[%s996_s1] ss:$0 sm:$0xff]  ;;  %s3809_s1 = sld [smem:[#allocation25_spill]] }
 0x131   : > { %v1102_v12 = vsel %vm1090_vm12, %v2534_v62, %v2535_v63  ;;  %v1101_v16 = vsel %vm1089_vm13, %v2534_v62, %v2535_v63 }
 0x133   : > { %2692 = vmatpush3.bf16.msra.mxu0 %v2880_v50 }
 0x134   : > { %2693 = vmatprep.subr.bf16.mxu0 %v3097_v30 }
 0x136   : > { %s1011_s23 = scalar_lea.vmem %s3809_s1, %s3819_s2 }
 0x137   : > { %2694 = vmatpush3.bf16.msra.mxu0 %v2884_v53 }
 0x138   : > { %2695 = vmatprep.subr.bf16.mxu0 %v3097_v30 }
 0x13b   : > { %2696 = vmatpush3.bf16.msra.mxu0 %v2888_v56 }
 0x13c   : > { %2697 = vmatprep.subr.bf16.mxu0 %v3097_v30 }
 0x13f   : > { %2698 = vmatpush3.bf16.msra.mxu0 %v2889_v57 }
 0x140   : > { %2699 = vmatprep.subr.bf16.mxu0 %v3097_v30 }
 0x143   : > { %2700 = vmatpush3.bf16.msra.mxu0 %v2890_v58 }
 0x144   : > { %2701 = vmatprep.subr.bf16.mxu0 %v3097_v30 }
 0x147   : > { %2702 = vmatpush3.bf16.msra.mxu0 %v2891_v59 }
 0x148   : > { %2707 = vmatprep.subr.bf16.mxu0 %v3097_v30 }
 0x1fd   : > { %v2683_v4 = vpop.f32.mrb[0].mxu0 }
 0x1fe   : > { %v1188_v6 = vadd.f32 %v2683_v4, %v1100_v3  ;;  %v1182_v8 = vpop.f32.mrb[1].mxu0 }
 0x1ff   : > { %v1183_v9 = vadd.f32 %v1182_v8, %v1099_v7  ;;  %v1549_v8 = vmul.u32 8, %v1227_v37  ;;  %v2898_v37 = vld [vmem:[%s3426_s13 + $0x30] sm:$0xff]  }
 0x200   : > { %v3539_v10 = vadd.f32 %v1201_v5, %v1188_v6 }
 0x201   : > { %v3541_v11 = vadd.f32 %v1201_v5, %v1183_v9  ;;  %v2686_v13 = vpop.f32.mrb[2].mxu0  ;;  %v1551_v9 = vadd.s32 8, %v1549_v8  ;;  %vm1550_vm1 = vcmp.ge.s32.totalorder %v3492_v39, %v1549_v8  ;;  %v3624_v8 = vsel %vm1738_vm7, 1.0, %v3097_v30 }
 0x202   : > { %v1370_v14 = vpack.c.bf16 %v3539_v10, %v3539_v10  ;;  %v1198_v15 = vadd.f32 %v2686_v13, %v1102_v12  ;;  %v1192_v17 = vpop.f32.mrb[3].mxu0  ;;  %v2566_v13 = vld [vmem:[%s971_s15] ss:$0 sm:$0xff]  ;;  %s3810_s15 = sld [smem:[#allocation26_spill]] }
 0x203   : > { %v1193_v18 = vadd.f32 %v1192_v17, %v1101_v16  ;;  %v1206_v19 = vpack.c.bf16 %v3539_v10, %v3541_v11  ;;  %v1369_v21 = vpack.c.bf16 %v3541_v11, %v3541_v11  ;;  %vm1552_vm2 = vcmp.lt.s32.totalorder %v3492_v39, %v1551_v9 }
 0x204   : > { %v1401_v20 = vunpack.c.l.b16 %v1370_v14  ;;  %v3549_v22 = vadd.f32 %v1201_v5, %v1198_v15  ;;  %vm1553_vm3 = vmand %vm1550_vm1, %vm1552_vm2 }
 0x205   : > { %v3551_v23 = vadd.f32 %v1201_v5, %v1193_v18  ;;  %1349 = vmatmul.mubr.bf16.vlgmr.msra.gmra.mrb[0].mxu1 %v1206_v19  ;;  %v1400_v27 = vunpack.c.l.b16 %v1369_v21  ;;  %v2565_v12 = vsel %vm1553_vm3, 1.0, %v3097_v30 }
 0x206   : > { %v1372_v24 = vpack.c.bf16 %v3549_v22, %v3549_v22  ;;  %1358 = vmatprep.mubr.bf16.mxu1 %v3096_v0  ;;  %v1404_v26 = vrot.slane %v1401_v20, 7  ;;  %v1563_v14 = vmul.f32 %v2566_v13, %v2565_v12 }
 0x207   : > { %v1371_v25 = vpack.c.bf16 %v3551_v23, %v3551_v23  ;;  %v1207_v32 = vpack.c.bf16 %v3549_v22, %v3551_v23 }
 0x208   : > { %v1403_v28 = vunpack.c.l.b16 %v1372_v24  ;;  %v1406_v33 = vsel %vm1405_vm14, %v1404_v26, %v1400_v27  ;;  %v2567_v15 = vadd.f32 -1.0, %v1563_v14  ;;  %s1014_s26 = scalar_lea.vmem %s3810_s15, %s3819_s2 }
 0x209   : > { %v1402_v29 = vunpack.c.l.b16 %v1371_v25 }
 0x20a   : > { %v1410_v34 = vrot.slane %v1403_v28, 5  ;;  %v1565_v16 = vmul.f32 1e+09, %v2567_v15 }
 0x20b   : > { %v1407_v31 = vrot.slane %v1402_v29, 6 }
 0x20d   : > { %v1409_v0 = vsel %vm1408_vm15, %v1407_v31, %v1406_v33  ;;  %1359 = vmatmul.mubr.bf16.gmra.mrb[4].mxu1 %v1207_v32  ;;  %v2892_v32 = vld [vmem:[%s3426_s13] sm:$0xff]   ;;  %v2893_v33 = vld [vmem:[%s3426_s13 + $0x8] sm:$0xff]  }
 0x20e   : > { %v1412_v35 = vsel %vm1411_vm0, %v1410_v34, %v1409_v0  ;;  %2739 = vmatprep.mubr.msk.bf16.mxu1 %vm3098_vm9, %v3097_v30  ;;  %2724 = vmatpush3.bf16.msra.mxu1 %v2892_v32  ;;  %v2894_v34 = vld [vmem:[%s3426_s13 + $0x10] sm:$0xff]   ;;  %v2895_v0 = vld [vmem:[%s3426_s13 + $0x18] sm:$0xff]   ;;  %v2901_v32 = vld [vmem:[%s3432_s27 + $0x8] sm:$0xff]  }
 0x20f   : > { %v1413_v36 = vpack.c.b16 %v1412_v35, %v1412_v35  ;;  %2725 = vmatprep.subr.bf16.mxu1 %v3097_v30  ;;  %v2896_v35 = vld [vmem:[%s3426_s13 + $0x20] sm:$0xff]  }
 0x211   : > { %2704 = vmatmul.mubr.bf16.vlgmr.msra.gmra.mrb[4].mxu0 %v1413_v36  ;;  %v2897_v36 = vld [vmem:[%s3426_s13 + $0x28] sm:$0xff]  }
 0x212   : > { %2711 = vmatprep.mubr.msk.bf16.mxu0 %vm3098_vm9, %v3097_v30  ;;  %2726 = vmatpush3.bf16.msra.mxu1 %v2893_v33  ;;  %v2902_v33 = vld [vmem:[%s3432_s27 + $0x10] sm:$0xff]  }
 0x213   : > { %2727 = vmatprep.subr.bf16.mxu1 %v3097_v30 }
 0x216   : > { %2728 = vmatpush3.bf16.msra.mxu1 %v2894_v34  ;;  %v2903_v34 = vld [vmem:[%s3432_s27 + $0x18] sm:$0xff]  }
 0x217   : > { %2729 = vmatprep.subr.bf16.mxu1 %v3097_v30 }
 0x21a   : > { %2730 = vmatpush3.bf16.msra.mxu1 %v2895_v0  ;;  %v2904_v0 = vld [vmem:[%s3432_s27 + $0x20] sm:$0xff]  }
 0x21b   : > { %2731 = vmatprep.subr.bf16.mxu1 %v3097_v30 }
 0x21e   : > { %2732 = vmatpush3.bf16.msra.mxu1 %v2896_v35  ;;  %v2905_v35 = vld [vmem:[%s3432_s27 + $0x28] sm:$0xff]  }
 0x21f   : > { %2733 = vmatprep.subr.bf16.mxu1 %v3097_v30 }
 0x222   : > { %2734 = vmatpush3.bf16.msra.mxu1 %v2897_v36  ;;  %v2906_v36 = vld [vmem:[%s3432_s27 + $0x30] sm:$0xff]  }
 0x223   : > { %2735 = vmatprep.subr.bf16.mxu1 %v3097_v30 }
 0x226   : > { %2736 = vmatpush3.bf16.msra.mxu1 %v2898_v37  ;;  %v2907_v37 = vld [vmem:[%s3432_s27 + $0x38] sm:$0xff]  }
 0x227   : > { %2737 = vmatprep.subr.bf16.mxu1 %v3097_v30 }
 0x2d8   : > { %v1350_v45 = vpop.f32.mrb[0].mxu1 }
 0x2d9   : > { %v1351_v46 = vadd.f32 %v1350_v45, %v1229_v43  ;;  %v1352_v47 = vpop.f32.mrb[1].mxu1 }
 0x2da   : > { %v1353_v48 = vadd.f32 %v1352_v47, %v1233_v44  ;;  %v1354_v49 = vpop.f32.mrb[2].mxu1 }
 0x2db   : > { %v1355_v50 = vadd.f32 %v1354_v49, %v1229_v43  ;;  %v1356_v51 = vpop.f32.mrb[3].mxu1 }
 0x2dc   : > { %v1357_v52 = vadd.f32 %v1356_v51, %v1233_v44 }
 0x2dd   : > { %v1504_v38 = vpack.c.bf16 %v1355_v50, %v1351_v46  ;;  %v2569_v50 = vld [vmem:[%s999_s25] ss:$0 sm:$0xff] }
 0x2de   : > { %v1580_v53 = vpack.c.bf16 %v1357_v52, %v1353_v48 }
 0x2df   : > { %2708 = vmatpush3.bf16.xpose.msra.mxu0 %v1504_v38 }
 0x2e0   : > { %v1360_v54 = vpop.f32.mrb[4].mxu1  ;;  %2709 = vmatprep.subr.bf16.mxu0 %v3097_v30 }
 0x2e1   : > { %v1361_v55 = vadd.f32 %v1360_v54, %v1229_v43  ;;  %v1362_v56 = vpop.f32.mrb[5].mxu1 }
 0x2e2   : > { %v1363_v57 = vadd.f32 %v1362_v56, %v1233_v44  ;;  %v1364_v58 = vpop.f32.mrb[6].mxu1 }
 0x2e3   : > { %v1365_v59 = vadd.f32 %v1364_v58, %v1229_v43  ;;  %v1366_v60 = vpop.f32.mrb[7].mxu1 }
 0x2e4   : > { %v1367_v61 = vadd.f32 %v1366_v60, %v1233_v44  ;;  %v1497_v62 = vpop.f32.mrb[4].mxu0  ;;  %v2899_v44 = vld [vmem:[%s3426_s13 + $0x38] sm:$0xff]   ;;  %s3811_s13 = sld [smem:[#allocation27_spill]] }
 0x2e5   : > { %v1505_v63 = vpack.c.bf16 %v1365_v59, %v1361_v55  ;;  %v2705_v2 = vpop.f32.mrb[5].mxu0  ;;  %v1498_v6 = vadd.f32 %v2556_v1, %v1497_v62  ;;  %2738 = vmatpush3.bf16.msra.mxu1 %v2899_v44  ;;  %v2579_v44 = vld [vmem:[%s1002_s21] ss:$0 sm:$0xff] }
 0x2e6   : > { %v1581_v3 = vpack.c.bf16 %v1367_v61, %v1363_v57  ;;  %v1500_v4 = vpop.f32.mrb[6].mxu0  ;;  %2763 = vmatprep.subr.bf16.mxu1 %v3097_v30 }
 0x2e7   : > { %v2706_v5 = vpop.f32.mrb[7].mxu0  ;;  %2710 = vmatpush3.bf16.xpose.msra.mxu0 %v1505_v63  ;;  %v1503_v7 = vpack.c.bf16 %v1498_v6, %v1498_v6 }
 0x2e8   : > { %2715 = vmatprep.subr.bf16.mxu0 %v3097_v30 }
 0x2ea   : > { %s1017_s24 = scalar_lea.vmem %s3811_s13, %s3819_s2 }
 0x2ee   : > { %2712 = vmatmul.mubr.bf16.vlgmr.msra.gmra.mrb[8].mxu0 %v1503_v7 }
 0x2ef   : > { %2716 = vmatpush3.bf16.msra.mxu0 %v1580_v53  ;;  %2719 = vmatprep.mubr.msk.bf16.mxu0 %vm3098_vm9, %v3097_v30 }
 0x2f0   : > { %2717 = vmatprep.subr.bf16.mxu0 %v3097_v30 }
 0x2f3   : > { %2718 = vmatpush3.bf16.msra.mxu0 %v1581_v3 }
 0x2f4   : > { %2743 = vmatprep.subr.bf16.mxu0 %v3097_v30 }
 0x3c1   : > { %v1540_v17 = vpop.f32.mrb[8].mxu0 }
 0x3c2   : > { %v1546_v18 = vmul.f32 0.17677669, %v1540_v17  ;;  %v2713_v19 = vpop.f32.mrb[9].mxu0 }
 0x3c3   : > { %v1543_v20 = vpop.f32.mrb[10].mxu0 }
 0x3c4   : > { %v2714_v21 = vpop.f32.mrb[11].mxu0  ;;  %v1566_v24 = vadd.f32 %v1565_v16, %v1546_v18 }
 0x3c6   : > { %v1568_v25 = vsel %vm1567_vm4, %v1566_v24, -inf }
 0x3c7   : > { %1569 = vmax.xlane.f32.xlu0 %v1568_v25 }
 0x454   : > { %v1570_v26 = vpop.xlane.xlu0 %1569 }
 0x455   : > { %v1571_v27 = vsub.f32 %v1566_v24, %v1570_v26 }
 0x457   : > { %v1572_v28 = vmul.f32 1.442695, %v1571_v27 }
 0x459   : > { %2916 = vpow2.f32 %v1572_v28 }
 0x463   : > { %v2917_v29 = vpop.eup %2916 }
 0x464   : > { %v1574_v31 = vsel %vm1567_vm4, %v2917_v29, 0.0 }
 0x465   : > { %1575 = vadd.xlane.f32.xlu1 %v1574_v31  ;;  %v2900_v31 = vld [vmem:[%s3432_s27] sm:$0xff]  }
 0x4f2   : > { %v1576_v40 = vpop.xlane.xlu1 %1575 }
 0x4f3   : > { %2918 = vrcp.f32 %v1576_v40 }
 0x4fd   : > { %v2919_v41 = vpop.eup %2918 }
 0x4fe   : > { %v1578_v42 = vmul.f32 %v2919_v41, %v2917_v29 }
 0x500   : > { %v1579_v43 = vpack.c.bf16 %v1578_v42, %v1578_v42 }
 0x502   : > { %2720 = vmatmul.mubr.msk.bf16.vlgmr.msra.gmra.mrb[12].mxu0 %vm1582_vm5, %v1579_v43 }
 0x503   : > { %2759 = vmatprep.mubr.msk.bf16.mxu0 %vm3098_vm9, %v3097_v30  ;;  %2744 = vmatpush3.bf16.msra.mxu0 %v2900_v31 }
 0x504   : > { %2745 = vmatprep.subr.bf16.mxu0 %v3097_v30 }
 0x507   : > { %2746 = vmatpush3.bf16.msra.mxu0 %v2901_v32 }
 0x508   : > { %2747 = vmatprep.subr.bf16.mxu0 %v3097_v30 }
 0x50b   : > { %2748 = vmatpush3.bf16.msra.mxu0 %v2902_v33 }
 0x50c   : > { %2749 = vmatprep.subr.bf16.mxu0 %v3097_v30 }
 0x50f   : > { %2750 = vmatpush3.bf16.msra.mxu0 %v2903_v34 }
 0x510   : > { %2751 = vmatprep.subr.bf16.mxu0 %v3097_v30 }
 0x513   : > { %2752 = vmatpush3.bf16.msra.mxu0 %v2904_v0 }
 0x514   : > { %2753 = vmatprep.subr.bf16.mxu0 %v3097_v30 }
 0x517   : > { %2754 = vmatpush3.bf16.msra.mxu0 %v2905_v35  ;;  %v2590_v35 = vld [vmem:[%s1011_s23] ss:$0 sm:$0xff] }
 0x518   : > { %2755 = vmatprep.subr.bf16.mxu0 %v3097_v30 }
 0x51b   : > { %2756 = vmatpush3.bf16.msra.mxu0 %v2906_v36 }
 0x51c   : > { %2757 = vmatprep.subr.bf16.mxu0 %v3097_v30 }
 0x51f   : > { %2758 = vmatpush3.bf16.msra.mxu0 %v2907_v37 }
 0x5d5   : > { %v1620_v45 = vpop.f32.mrb[12].mxu0 }
 0x5d6   : > { %v1626_v46 = vpack.c.bf16 %v1620_v45, %v1620_v45  ;;  %v2721_v47 = vpop.f32.mrb[13].mxu0 }
 0x5d7   : > { %v1623_v48 = vpop.f32.mrb[14].mxu0 }
 0x5d8   : > { %v2722_v49 = vpop.f32.mrb[15].mxu0  ;;  %2740 = vmatmul.mubr.bf16.vlgmr.msra.gmra.mrb[8].mxu1 %v1626_v46 }
 0x5d9   : > { %2779 = vmatprep.mubr.msk.bf16.mxu1 %vm3098_vm9, %v3097_v30  ;;  %v2580_v49 = vld [vmem:[%s1005_s29] ss:$0 sm:$0xff] }
 0x6ab   : > { %v1732_v51 = vpop.f32.mrb[8].mxu1 }
 0x6ac   : > { %v1733_v52 = vadd.f32 %v2569_v50, %v1732_v51  ;;  %v2741_v38 = vpop.f32.mrb[9].mxu1 }
 0x6ad   : > { %v1735_v53 = vpop.f32.mrb[10].mxu1 }
 0x6ae   : > { %v1742_v54 = vrot.slane %v1733_v52, 1  ;;  %v1743_v55 = vrot.slane %v1733_v52, 2  ;;  %v1744_v56 = vrot.slane %v1733_v52, 3  ;;  %v2742_v57 = vpop.f32.mrb[11].mxu1  ;;  %v1749_v61 = vadd.f32 %v1733_v52, %v3541_v11 }
 0x6b0   : > { %v1750_v58 = vadd.f32 %v1742_v54, %v3539_v10  ;;  %v1751_v59 = vadd.f32 %v1743_v55, %v3551_v23  ;;  %v1752_v60 = vadd.f32 %v1744_v56, %v3549_v22 }
 0x6b2   : > { %v1759_v62 = vrot.slane %v1750_v58, 7  ;;  %v1761_v63 = vrot.slane %v1751_v59, 6  ;;  %v1763_v2 = vrot.slane %v1752_v60, 5 }
 0x6b4   : > { %v1760_v1 = vsel %vm1405_vm14, %v1759_v62, %v1749_v61 }
 0x6b5   : > { %v1762_v3 = vsel %vm1408_vm15, %v1761_v63, %v1760_v1 }
 0x6b6   : > { %v1764_v4 = vsel %vm1411_vm0, %v1763_v2, %v1762_v3 }
 0x6b7   : > { %v1767_v5 = vsel %vm1766_vm6, %v1764_v4, 0.0 }
 0x6b8   : > { %1768 = vadd.xlane.f32.xlu0 %v1767_v5 }
 0x745   : > { %v1769_v10 = vpop.xlane.xlu0 %1768 }
 0x746   : > { %v1770_v23 = vmul.f32 0.03125, %v1769_v10 }
 0x748   : > { %v1772_v22 = vrot.slane %v1770_v23, 1  ;;  %v1773_v6 = vrot.slane %v1770_v23, 2  ;;  %v1774_v11 = vrot.slane %v1770_v23, 3  ;;  %v1779_v7 = vsub.f32 %v1749_v61, %v1770_v23 }
 0x74a   : > { %v1780_v9 = vsub.f32 %v1750_v58, %v1772_v22  ;;  %v1781_v12 = vsub.f32 %v1751_v59, %v1773_v6  ;;  %v1782_v13 = vsub.f32 %v1752_v60, %v1774_v11  ;;  %v1783_v14 = vmul.f32 %v3624_v8, %v1779_v7 }
 0x74c   : > { %v1784_v15 = vmul.f32 %v3624_v8, %v1780_v9  ;;  %v1785_v16 = vmul.f32 %v3624_v8, %v1781_v12  ;;  %v1786_v39 = vmul.f32 %v3624_v8, %v1782_v13  ;;  %v1787_v20 = vmul.f32 %v1783_v14, %v1783_v14  ;;  %v2908_v9 = vld [vmem:[%s3434_s17] sm:$0xff]   ;;  %v2909_v12 = vld [vmem:[%s3434_s17 + $0x8] sm:$0xff]   ;;  %v2910_v13 = vld [vmem:[%s3434_s17 + $0x10] sm:$0xff]  }
 0x74d   : > { %2764 = vmatpush3.bf16.msra.mxu1 %v2908_v9 }
 0x74e   : > { %v1788_v17 = vmul.f32 %v1784_v15, %v1784_v15  ;;  %v1789_v18 = vmul.f32 %v1785_v16, %v1785_v16  ;;  %v1790_v19 = vmul.f32 %v1786_v39, %v1786_v39  ;;  %2765 = vmatprep.subr.bf16.mxu1 %v3097_v30 }
 0x750   : > { %v1795_v21 = vrot.slane %v1788_v17, 7  ;;  %v1797_v24 = vrot.slane %v1789_v18, 6  ;;  %v1799_v26 = vrot.slane %v1790_v19, 5  ;;  %v2915_v17 = vld [vmem:[%s3434_s17 + $0x38] sm:$0xff]   ;;  %v2581_v18 = vld [vmem:[%s1008_s20] ss:$0 sm:$0xff] }
 0x751   : > { %2766 = vmatpush3.bf16.msra.mxu1 %v2909_v12 }
 0x752   : > { %v1796_v25 = vsel %vm1405_vm14, %v1795_v21, %v1787_v20  ;;  %2767 = vmatprep.subr.bf16.mxu1 %v3097_v30 }
 0x753   : > { %v1798_v27 = vsel %vm1408_vm15, %v1797_v24, %v1796_v25 }
 0x754   : > { %v1800_v28 = vsel %vm1411_vm0, %v1799_v26, %v1798_v27 }
 0x755   : > { %v1802_v29 = vsel %vm1766_vm6, %v1800_v28, 0.0  ;;  %2768 = vmatpush3.bf16.msra.mxu1 %v2910_v13 }
 0x756   : > { %1803 = vadd.xlane.f32.xlu0 %v1802_v29  ;;  %2769 = vmatprep.subr.bf16.mxu1 %v3097_v30 }
 0x7e3   : > { %v1804_v40 = vpop.xlane.xlu0 %1803 }
 0x7e4   : > { %v1805_v41 = vmul.f32 0.03125, %v1804_v40 }
 0x7e6   : > { %v1806_v42 = vadd.f32 1e-12, %v1805_v41 }
 0x7e8   : > { %2920 = vrsqrt.f32 %v1806_v42 }
 0x7f2   : > { %v2921_v43 = vpop.eup %2920 }
 0x7f3   : > { %v1809_v45 = vrot.slane %v2921_v43, 1  ;;  %v1810_v46 = vrot.slane %v2921_v43, 2  ;;  %v1811_v47 = vrot.slane %v2921_v43, 3  ;;  %v1816_v48 = vmul.f32 %v2921_v43, %v1783_v14  ;;  %v2911_v14 = vld [vmem:[%s3434_s17 + $0x18] sm:$0xff]  }
 0x7f4   : > { %2770 = vmatpush3.bf16.msra.mxu1 %v2911_v14 }
 0x7f5   : > { %v1817_v50 = vmul.f32 %v1809_v45, %v1784_v15  ;;  %v1818_v51 = vmul.f32 %v1810_v46, %v1785_v16  ;;  %v1819_v52 = vmul.f32 %v1811_v47, %v1786_v39  ;;  %v1826_v38 = vmul.f32 %v2579_v44, %v1816_v48  ;;  %v2912_v15 = vld [vmem:[%s3434_s17 + $0x20] sm:$0xff]   ;;  %2771 = vmatprep.subr.bf16.mxu1 %v3097_v30  ;;  %v2913_v16 = vld [vmem:[%s3434_s17 + $0x28] sm:$0xff]   ;;  %v2914_v39 = vld [vmem:[%s3434_s17 + $0x30] sm:$0xff]  }
 0x7f7   : > { %v1827_v53 = vmul.f32 %v2579_v44, %v1817_v50  ;;  %v1828_v54 = vmul.f32 %v2579_v44, %v1818_v51  ;;  %v1829_v55 = vmul.f32 %v2579_v44, %v1819_v52  ;;  %v3657_v56 = vadd.f32 %v2580_v49, %v1826_v38 }
 0x7f8   : > { %2772 = vmatpush3.bf16.msra.mxu1 %v2912_v15 }
 0x7f9   : > { %v3659_v57 = vadd.f32 %v2580_v49, %v1827_v53  ;;  %v3661_v58 = vadd.f32 %v2580_v49, %v1828_v54  ;;  %v3663_v59 = vadd.f32 %v2580_v49, %v1829_v55  ;;  %v1840_v60 = vpack.c.bf16 %v3657_v56, %v3657_v56  ;;  %2773 = vmatprep.subr.bf16.mxu1 %v3097_v30 }
 0x7fb   : > { %v1841_v61 = vpack.c.bf16 %v3659_v57, %v3659_v57  ;;  %v1842_v62 = vpack.c.bf16 %v3661_v58, %v3661_v58  ;;  %v1843_v63 = vpack.c.bf16 %v3663_v59, %v3663_v59  ;;  %v1871_v4 = vunpack.c.l.b16 %v1840_v60 }
 0x7fc   : > { %2774 = vmatpush3.bf16.msra.mxu1 %v2913_v16 }
 0x7fd   : > { %v1872_v1 = vunpack.c.l.b16 %v1841_v61  ;;  %v1873_v2 = vunpack.c.l.b16 %v1842_v62  ;;  %v1874_v3 = vunpack.c.l.b16 %v1843_v63  ;;  %2775 = vmatprep.subr.bf16.mxu1 %v3097_v30 }
 0x7ff   : > { %v1875_v5 = vrot.slane %v1872_v1, 7  ;;  %v1877_v10 = vrot.slane %v1873_v2, 6  ;;  %v1879_v22 = vrot.slane %v1874_v3, 5 }
 0x800   : > { %2776 = vmatpush3.bf16.msra.mxu1 %v2914_v39 }
 0x801   : > { %v1876_v23 = vsel %vm1405_vm14, %v1875_v5, %v1871_v4  ;;  %2777 = vmatprep.subr.bf16.mxu1 %v3097_v30 }
 0x802   : > { %v1878_v6 = vsel %vm1408_vm15, %v1877_v10, %v1876_v23 }
 0x803   : > { %v1880_v11 = vsel %vm1411_vm0, %v1879_v22, %v1878_v6 }
 0x804   : > { %v1881_v7 = vpack.c.b16 %v1880_v11, %v1880_v11  ;;  %2778 = vmatpush3.bf16.msra.mxu1 %v2915_v17 }
 0x806   : > { %2760 = vmatmul.mubr.bf16.vlgmr.msra.gmra.mrb[16].mxu0 %v1881_v7 }
 0x8d9   : > { %v1965_v19 = vpop.f32.mrb[16].mxu0 }
 0x8da   : > { %v1966_v20 = vadd.f32 %v2581_v18, %v1965_v19  ;;  %v2761_v21 = vpop.f32.mrb[17].mxu0 }
 0x8db   : > { %v1968_v24 = vpop.f32.mrb[18].mxu0 }
 0x8dc   : > { %v1971_v25 = vmul.f32 %v1966_v20, %v1966_v20  ;;  %v2762_v26 = vpop.f32.mrb[19].mxu0  ;;  %v2599_v24 = vld [vmem:[%s1014_s26] ss:$0 sm:$0xff] }
 0x8de   : > { %v1972_v27 = vmul.f32 %v1971_v25, %v1966_v20 }
 0x8e0   : > { %v1973_v28 = vmul.f32 0.044715, %v1972_v27 }
 0x8e2   : > { %v1974_v29 = vadd.f32 %v1973_v28, %v1966_v20 }
 0x8e4   : > { %v1975_v31 = vmul.f32 0.7978846, %v1974_v29 }
 0x8e6   : > { %2922 = vtanh.f32 %v1975_v31 }
 0x8f0   : > { %v2923_v32 = vpop.eup %2922 }
 0x8f1   : > { %v1977_v30 = vadd.f32 1.0, %v2923_v32 }
 0x8f3   : > { %v1978_v33 = vmul.f32 0.5, %v1977_v30  ;;  %v2600_v30 = vld [vmem:[%s1017_s24] ss:$0 sm:$0xff] }
 0x8f5   : > { %v1979_v34 = vmul.f32 %v1978_v33, %v1966_v20 }
 0x8f7   : > { %v1980_v0 = vpack.c.bf16 %v1979_v34, %v1979_v34 }
 0x8f9   : > { %2780 = vmatmul.mubr.bf16.vlgmr.msra.gmra.mrb[12].mxu1 %v1980_v0 }
 0x9cc   : > { %v2086_v36 = vpop.f32.mrb[12].mxu1 }
 0x9cd   : > { %v2087_v37 = vadd.f32 %v2590_v35, %v2086_v36  ;;  %v2781_v40 = vpop.f32.mrb[13].mxu1 }
 0x9ce   : > { %v2089_v41 = vpop.f32.mrb[14].mxu1 }
 0x9cf   : > { %v2093_v42 = vrot.slane %v2087_v37, 1  ;;  %v2094_v43 = vrot.slane %v2087_v37, 2  ;;  %v2095_v44 = vrot.slane %v2087_v37, 3  ;;  %v2782_v45 = vpop.f32.mrb[15].mxu1  ;;  %v2100_v49 = vadd.f32 %v2087_v37, %v3657_v56 }
 0x9d1   : > { %v2101_v46 = vadd.f32 %v2093_v42, %v3659_v57  ;;  %v2102_v47 = vadd.f32 %v2094_v43, %v3661_v58  ;;  %v2103_v48 = vadd.f32 %v2095_v44, %v3663_v59 }
 0x9d3   : > { %v2110_v50 = vrot.slane %v2101_v46, 7  ;;  %v2112_v51 = vrot.slane %v2102_v47, 6  ;;  %v2114_v38 = vrot.slane %v2103_v48, 5 }
 0x9d5   : > { %v2111_v52 = vsel %vm1405_vm14, %v2110_v50, %v2100_v49 }
 0x9d6   : > { %v2113_v53 = vsel %vm1408_vm15, %v2112_v51, %v2111_v52 }
 0x9d7   : > { %v2115_v54 = vsel %vm1411_vm0, %v2114_v38, %v2113_v53 }
 0x9d8   : > { %v2117_v55 = vsel %vm1766_vm6, %v2115_v54, 0.0 }
 0x9d9   : > { %2118 = vadd.xlane.f32.xlu1 %v2117_v55 }
 0xa66   : > { %v2119_v60 = vpop.xlane.xlu1 %2118 }
 0xa67   : > { %v2120_v57 = vmul.f32 0.03125, %v2119_v60 }
 0xa69   : > { %v2122_v61 = vrot.slane %v2120_v57, 1  ;;  %v2123_v58 = vrot.slane %v2120_v57, 2  ;;  %v2124_v62 = vrot.slane %v2120_v57, 3  ;;  %v2129_v59 = vsub.f32 %v2100_v49, %v2120_v57 }
 0xa6b   : > { %v2130_v63 = vsub.f32 %v2101_v46, %v2122_v61  ;;  %v2131_v56 = vsub.f32 %v2102_v47, %v2123_v58  ;;  %v2132_v1 = vsub.f32 %v2103_v48, %v2124_v62  ;;  %v2133_v2 = vmul.f32 %v3624_v8, %v2129_v59 }
 0xa6d   : > { %v2134_v3 = vmul.f32 %v3624_v8, %v2130_v63  ;;  %v2135_v4 = vmul.f32 %v3624_v8, %v2131_v56  ;;  %v2136_v5 = vmul.f32 %v3624_v8, %v2132_v1  ;;  %v2137_v6 = vmul.f32 %v2133_v2, %v2133_v2 }
 0xa6f   : > { %v2138_v10 = vmul.f32 %v2134_v3, %v2134_v3  ;;  %v2139_v23 = vmul.f32 %v2135_v4, %v2135_v4  ;;  %v2140_v22 = vmul.f32 %v2136_v5, %v2136_v5 }
 0xa71   : > { %v2145_v11 = vrot.slane %v2138_v10, 7  ;;  %v2147_v7 = vrot.slane %v2139_v23, 6  ;;  %v2149_v12 = vrot.slane %v2140_v22, 5 }
 0xa73   : > { %v2146_v9 = vsel %vm1405_vm14, %v2145_v11, %v2137_v6 }
 0xa74   : > { %v2148_v13 = vsel %vm1408_vm15, %v2147_v7, %v2146_v9 }
 0xa75   : > { %v2150_v14 = vsel %vm1411_vm0, %v2149_v12, %v2148_v13 }
 0xa76   : > { %v2152_v15 = vsel %vm1766_vm6, %v2150_v14, 0.0 }
 0xa77   : > { %2153 = vadd.xlane.f32.xlu0 %v2152_v15 }
 0xb04   : > { %v2154_v16 = vpop.xlane.xlu0 %2153 }
 0xb05   : > { %v2155_v8 = vmul.f32 0.03125, %v2154_v16 }
 0xb07   : > { %v2156_v39 = vadd.f32 1e-12, %v2155_v8 }
 0xb09   : > { %2924 = vrsqrt.f32 %v2156_v39 }
 0xb13   : > { %v2925_v17 = vpop.eup %2924 }
 0xb14   : > { %v2159_v18 = vrot.slane %v2925_v17, 1  ;;  %v2160_v19 = vrot.slane %v2925_v17, 2  ;;  %v2161_v20 = vrot.slane %v2925_v17, 3  ;;  %v2166_v21 = vmul.f32 %v2925_v17, %v2133_v2 }
 0xb16   : > { %v2167_v25 = vmul.f32 %v2159_v18, %v2134_v3  ;;  %v2168_v26 = vmul.f32 %v2160_v19, %v2135_v4  ;;  %v2169_v27 = vmul.f32 %v2161_v20, %v2136_v5  ;;  %v2176_v28 = vmul.f32 %v2599_v24, %v2166_v21 }
 0xb18   : > { %v2177_v29 = vmul.f32 %v2599_v24, %v2167_v25  ;;  %v2178_v31 = vmul.f32 %v2599_v24, %v2168_v26  ;;  %v2179_v32 = vmul.f32 %v2599_v24, %v2169_v27  ;;  %v2186_v35 = vadd.f32 %v2600_v30, %v2176_v28 }
 0xb1a   : > { %v2187_v33 = vadd.f32 %v2600_v30, %v2177_v29  ;;  %v2188_v34 = vadd.f32 %v2600_v30, %v2178_v31  ;;  %v2189_v0 = vadd.f32 %v2600_v30, %v2179_v32 }
 0xb1c   : > { %v2194_v36 = vrot.slane %v2187_v33, 7  ;;  %v2196_v37 = vrot.slane %v2188_v34, 6  ;;  %v2198_v41 = vrot.slane %v2189_v0, 5 }
 0xb1e   : > { %v2195_v40 = vsel %vm1405_vm14, %v2194_v36, %v2186_v35 }
 0xb1f   : > { %v2197_v42 = vsel %vm1408_vm15, %v2196_v37, %v2195_v40 }
 0xb20   : > { %v2199_v43 = vsel %vm1411_vm0, %v2198_v41, %v2197_v42 }
 0xb21   : > { %2201 = vst [vmem:[%s1021_s10] sm:$0xf] %v2199_v43 }
 0xb22 PF: > { %s3813_s24 = sld [smem:[#allocation13_spill]]  ;;  %s3814_s29 = sld [smem:[#allocation12_spill]] }
 0xb23   : > { %s3815_s23 = sld [smem:[#allocation14_spill]]  ;;  %s3816_s1 = smov %s3080_s22 }
 0xb28   : > { %p36_p3 = scmp.ge.s32.totalorder %s3813_s24, 4   ;;  %s3817_s22 = smov %s3814_s29 }
 0xb2a   :  { %38 = sbr.rel (!%p36_p3) target bundleno = 22 (0x16), region = 225 }
 0xb31   :  { %2221 = vsyncpa [#allocation3], 1 }
 0xb32   :  { %2223 = vsyncpa [#allocation3 + $0x1], 1 }
 0xb33   :  { %2224 = vsyncpa [#allocation5], 1 }
 0xb34   :  { %2226 = vsyncpa [#allocation5 + $0x1], 1 }
 0xb35   :  { %2227 = vsyncpa [#allocation8], 1 }
 0xb36   :  { %2229 = vsyncpa [#allocation8 + $0x1], 1 }

</bundles_post_ra>
